<compile_context>
chip_gen: v7x
topology: tpu7x:2x2x1
jax: 0.10.0
libtpu: 0.0.40
codegen_flags: <defaults>
</compile_context>

<pallas_src>
import functools

import jax
import jax.numpy as jnp
from jax import lax
from jax.experimental import pallas as pl
from jax.experimental.pallas import tpu as pltpu


# ----------------------------- in-kernel helpers -----------------------------

def _erf(x):
    # Abramowitz & Stegun 7.1.26 polynomial approximation (|err| < 1.5e-7),
    # built only from ops guaranteed to lower on Mosaic (exp, mul, add, abs).
    # Kept (instead of tanh-GELU) to preserve torch.nn.GELU() exact-erf
    # semantics; exp() runs on the EUP slot anyway.
    p = 0.3275911
    a1, a2, a3, a4, a5 = (0.254829592, -0.284496736, 1.421413741,
                          -1.453152027, 1.061405429)
    sign = jnp.where(x < 0.0, -1.0, 1.0)
    ax = jnp.abs(x)
    t = 1.0 / (1.0 + p * ax)
    poly = ((((a5 * t + a4) * t + a3) * t + a2) * t + a1) * t
    return sign * (1.0 - poly * jnp.exp(-ax * ax))


def _gelu_exact(x):
    # Matches torch.nn.GELU() (erf-based, non-approximate).
    return 0.5 * x * (1.0 + _erf(x * 0.7071067811865476))


def _layer_norm(x, gamma, beta, eps=1e-5):
    mean = jnp.mean(x, axis=-1, keepdims=True)
    var = jnp.mean((x - mean) ** 2, axis=-1, keepdims=True)
    return (x - mean) * lax.rsqrt(var + eps) * gamma + beta


# --------------------------------- kernel ------------------------------------

def fused_encoder_kernel(n_heads, d_k, d_v, mxu_dtype,
                         x_ref, wq_ref, wk_ref, wv_ref, wo_ref,
                         ln1_g_ref, ln1_b_ref,
                         w1_ref, b1_ref, w2_ref, b2_ref,
                         ln2_g_ref, ln2_b_ref,
                         o_ref, act_ref):
    layer = pl.program_id(1)
    b_tile, q_len, d_model = x_ref.shape
    m = b_tile * q_len

    # Layer 0: load the input tile into the VMEM-resident activation.
    @pl.when(layer == 0)
    def _():
        act_ref[...] = x_ref[...].reshape(m, d_model).astype(jnp.float32)

    x = act_ref[...]                         # [m, d_model] f32, carried in VMEM
    xc = x.astype(mxu_dtype)

    # QKV projections (bias=False, like the PyTorch module).  Flattened over
    # all B_TILE sequences so the MXU M dimension is filled.
    q = jnp.dot(xc, wq_ref[0].astype(mxu_dtype), preferred_element_type=jnp.float32)
    k = jnp.dot(xc, wk_ref[0].astype(mxu_dtype), preferred_element_type=jnp.float32)
    v = jnp.dot(xc, wv_ref[0].astype(mxu_dtype), preferred_element_type=jnp.float32)

    # Per-sequence views (split the leading/sublane dim only — cheap reshape).
    q3 = q.reshape(b_tile, q_len, n_heads * d_k)
    k3 = k.reshape(b_tile, q_len, n_heads * d_k)
    v3 = v.reshape(b_tile, q_len, n_heads * d_v)

    wo = wo_ref[0]                           # [H*d_v, d_model], kept f32
    scale = 1.0 / (d_k ** 0.5)
    attn_out = jnp.zeros((m, d_model), jnp.float32)
    for h in range(n_heads):                 # static head loop
        q_h = q3[:, :, h * d_k:(h + 1) * d_k]        # [B, q_len, d_k]
        k_h = k3[:, :, h * d_k:(h + 1) * d_k]        # [B, q_len, d_k]
        v_h = v3[:, :, h * d_v:(h + 1) * d_v]        # [B, q_len, d_v]
        # scores[b,i,j] = sum_d q_h[b,i,d] * k_h[b,j,d]   (batched over B)
        scores = lax.dot_general(q_h, k_h, (((2,), (2,)), ((0,), (0,))),
                                 preferred_element_type=jnp.float32) * scale
        scores = scores - jnp.max(scores, axis=-1, keepdims=True)
        e = jnp.exp(scores)
        attn = e * pl.reciprocal(jnp.sum(e, axis=-1, keepdims=True), approx=True)
        ctx = lax.dot_general(attn, v_h, (((2,), (1,)), ((0,), (0,))),
                              preferred_element_type=jnp.float32)   # [B,q,d_v]
        # Accumulate this head's contribution through its slice of Wo
        # (equivalent to concat(ctx_heads) @ Wo, without the lane concat).
        attn_out = attn_out + jnp.dot(
            ctx.reshape(m, d_v), wo[h * d_v:(h + 1) * d_v, :],
            preferred_element_type=jnp.float32)

    # residual + LayerNorm (dropout = identity)
    src = _layer_norm(x + attn_out, ln1_g_ref[0], ln1_b_ref[0])

    # feed-forward: Linear -> GELU -> Linear
    h1 = jnp.dot(src.astype(mxu_dtype), w1_ref[0].astype(mxu_dtype),
                 preferred_element_type=jnp.float32) + b1_ref[0]
    h1 = _gelu_exact(h1)
    ff = jnp.dot(h1.astype(mxu_dtype), w2_ref[0].astype(mxu_dtype),
                 preferred_element_type=jnp.float32) + b2_ref[0]

    out = _layer_norm(src + ff, ln2_g_ref[0], ln2_b_ref[0])
    act_ref[...] = out                        # carry to next layer

    # Only the final layer writes the HBM output block.
    @pl.when(layer == pl.num_programs(1) - 1)
    def _():
        o_ref[...] = out.reshape(b_tile, q_len, d_model).astype(o_ref.dtype)


# --------------------------------- wrapper -----------------------------------

def tab_encoder(x, layer_params, n_heads, d_k, d_v, *,
                mxu_dtype=jnp.float32, b_tile=None, target_rows=256):
    """Full n_layers _TabEncoder forward in a single fused pallas_call."""
    bs, q_len, d_model = x.shape
    n_layers = len(layer_params)
    d_ff = layer_params[0]["w1"].shape[-1]

    # ---- batch tiling: fill the MXU M dimension (B_TILE*q_len rows) ----
    if b_tile is None:
        b_tile = max(1, min(bs, -(-target_rows // q_len)))
    pad = (-bs) % b_tile
    if pad:
        x = jnp.concatenate(
            [x, jnp.zeros((pad, q_len, d_model), x.dtype)], axis=0)
    padded_bs = bs + pad
    nb = padded_bs // b_tile

    # ---- stack per-layer params along a leading layer axis ----
    names = ["wq", "wk", "wv", "wo", "ln1_g", "ln1_b",
             "w1", "b1", "w2", "b2", "ln2_g", "ln2_b"]
    s = {n: jnp.stack([p[n] for p in layer_params], axis=0) for n in names}
    # bf16 MXU operands (v6e/v7x): halves weight DMA bytes, f32 accumulation.
    # Wo stays f32 (it is sliced per head on the sublane axis; tiny anyway).
    for n in ("wq", "wk", "wv", "w1", "w2"):
        s[n] = s[n].astype(mxu_dtype)

    def lspec(last_two):
        return pl.BlockSpec((1,) + last_two, lambda b, l: (l, 0, 0))

    in_specs = [
        pl.BlockSpec((b_tile, q_len, d_model), lambda b, l: (b, 0, 0)),  # x
        lspec((d_model, n_heads * d_k)),                                 # Wq
        lspec((d_model, n_heads * d_k)),                                 # Wk
        lspec((d_model, n_heads * d_v)),                                 # Wv
        lspec((n_heads * d_v, d_model)),                                 # Wo
        lspec((1, d_model)),                                             # ln1 g
        lspec((1, d_model)),                                             # ln1 b
        lspec((d_model, d_ff)),                                          # W1
        lspec((1, d_ff)),                                                # b1
        lspec((d_ff, d_model)),                                          # W2
        lspec((1, d_model)),                                             # b2
        lspec((1, d_model)),                                             # ln2 g
        lspec((1, d_model)),                                             # ln2 b
    ]
    out_spec = pl.BlockSpec((b_tile, q_len, d_model), lambda b, l: (b, 0, 0))

    # ---- advisory cost estimate for the XLA scheduler ----
    m_total = padded_bs * q_len
    flops = n_layers * (
        2 * m_total * d_model * (n_heads * d_k) * 2          # Wq, Wk
        + 2 * m_total * d_model * (n_heads * d_v)            # Wv
        + 2 * m_total * (n_heads * d_v) * d_model            # Wo
        + 2 * padded_bs * n_heads * q_len * q_len * (d_k + d_v)  # scores+ctx
        + 2 * m_total * d_model * d_ff * 2)                  # FFN
    transcendentals = n_layers * (padded_bs * n_heads * q_len * q_len
                                  + m_total * d_ff)
    bytes_accessed = (2 * padded_bs * q_len * d_model * x.dtype.itemsize
                      + sum(int(v.size) * v.dtype.itemsize for v in s.values()))
    cost = pl.CostEstimate(flops=int(flops),
                           transcendentals=int(transcendentals),
                           bytes_accessed=int(bytes_accessed))

    kernel = functools.partial(fused_encoder_kernel, n_heads, d_k, d_v,
                               mxu_dtype)

    out = pl.pallas_call(
        kernel,
        out_shape=jax.ShapeDtypeStruct((padded_bs, q_len, d_model), x.dtype),
        grid=(nb, n_layers),                      # layer axis innermost
        in_specs=in_specs,
        out_specs=out_spec,
        scratch_shapes=[pltpu.VMEM((b_tile * q_len, d_model), jnp.float32)],
        compiler_params=pltpu.CompilerParams(
            dimension_semantics=("parallel", "arbitrary"),
            vmem_limit_bytes=32 * 1024 * 1024),
        cost_estimate=cost,
    )(x, s["wq"], s["wk"], s["wv"], s["wo"], s["ln1_g"], s["ln1_b"],
      s["w1"], s["b1"], s["w2"], s["b2"], s["ln2_g"], s["ln2_b"])

    return out[:bs] if pad else out


# --------------------------- parameter construction ---------------------------

def init_layer_params(key, d_model, n_heads, d_k, d_v, d_ff):
    ks = jax.random.split(key, 8)

    def lin(k, fan_in, fan_out):
        # nn.Linear-style uniform(-1/sqrt(fan_in), 1/sqrt(fan_in)),
        # stored pre-transposed as [in, out].
        bound = 1.0 / (fan_in ** 0.5)
        return jax.random.uniform(k, (fan_in, fan_out), jnp.float32, -bound, bound)

    def bias(k, fan_in, n):
        bound = 1.0 / (fan_in ** 0.5)
        return jax.random.uniform(k, (1, n), jnp.float32, -bound, bound)

    return {
        "wq": lin(ks[0], d_model, n_heads * d_k),
        "wk": lin(ks[1], d_model, n_heads * d_k),
        "wv": lin(ks[2], d_model, n_heads * d_v),
        "wo": lin(ks[3], n_heads * d_v, d_model),
        "ln1_g": jnp.ones((1, d_model), jnp.float32),
        "ln1_b": jnp.zeros((1, d_model), jnp.float32),
        "w1": lin(ks[4], d_model, d_ff),
        "b1": bias(ks[5], d_model, d_ff),
        "w2": lin(ks[6], d_ff, d_model),
        "b2": bias(ks[7], d_ff, d_model),
        "ln2_g": jnp.ones((1, d_model), jnp.float32),
        "ln2_b": jnp.zeros((1, d_model), jnp.float32),
    }


# ------------------------------ pure-JAX reference ----------------------------

def ref_layer(x, p, n_heads, d_k, d_v):
    bs, q_len, d_model = x.shape
    q = (x @ p["wq"]).reshape(bs, q_len, n_heads, d_k).transpose(0, 2, 1, 3)
    k = (x @ p["wk"]).reshape(bs, q_len, n_heads, d_k).transpose(0, 2, 1, 3)
    v = (x @ p["wv"]).reshape(bs, q_len, n_heads, d_v).transpose(0, 2, 1, 3)
    scores = jnp.einsum("bhqd,bhkd->bhqk", q, k) / (d_k ** 0.5)
    attn = jax.nn.softmax(scores, axis=-1)
    ctx = jnp.einsum("bhqk,bhkd->bhqd", attn, v)
    ctx = ctx.transpose(0, 2, 1, 3).reshape(bs, q_len, n_heads * d_v)
    src = x + ctx @ p["wo"]
    mean = src.mean(-1, keepdims=True)
    var = ((src - mean) ** 2).mean(-1, keepdims=True)
    src = (src - mean) / jnp.sqrt(var + 1e-5) * p["ln1_g"] + p["ln1_b"]
    h = jax.nn.gelu(src @ p["w1"] + p["b1"], approximate=False)
    ff = h @ p["w2"] + p["b2"]
    out = src + ff
    mean = out.mean(-1, keepdims=True)
    var = ((out - mean) ** 2).mean(-1, keepdims=True)
    return (out - mean) / jnp.sqrt(var + 1e-5) * p["ln2_g"] + p["ln2_b"]


def ref_encoder(x, layer_params, n_heads, d_k, d_v):
    out = x
    for p in layer_params:
        out = ref_layer(out, p, n_heads, d_k, d_v)
    return out


# ----------------------------------- main -------------------------------------

if __name__ == "__main__":
    bs, q_len, d_model, n_heads, n_layers = 2, 8, 32, 4, 2
    d_k = d_v = d_model // n_heads
    d_ff = d_model * 4

    key = jax.random.PRNGKey(0)
    kx, kp = jax.random.split(key)
    x = jax.random.normal(kx, (bs, q_len, d_model), jnp.float32)

    layer_keys = jax.random.split(kp, n_layers)
    layer_params = [init_layer_params(k, d_model, n_heads, d_k, d_v, d_ff)
                    for k in layer_keys]

    ref = ref_encoder(x, layer_params, n_heads, d_k, d_v)

    # f32 path (tolerance widened slightly for the approx EUP reciprocal in softmax)
    out = tab_encoder(x, layer_params, n_heads, d_k, d_v)
    out = jax.block_until_ready(out)
    assert out.shape == (bs, q_len, d_model)
    assert bool(jnp.allclose(out, ref, rtol=5e-3, atol=5e-3)), "f32 mismatch vs reference"

    # bf16 MXU-operand path (v6e/v7x recipe); loose tolerance for operand rounding.
    out_bf16 = tab_encoder(x, layer_params, n_heads, d_k, d_v,
                           mxu_dtype=jnp.bfloat16)
    out_bf16 = jax.block_until_ready(out_bf16)
    assert bool(jnp.allclose(out_bf16, ref, rtol=1e-1, atol=1e-1)), "bf16 mismatch vs reference"

    print("KERNEL_OK")
</pallas_src>

<mosaic_0001>
module attributes {stable_mosaic.version = 11 : i64} {
  func.func @fused_encoder_kernel(%arg0: i32, %arg1: i32, %arg2: memref<2x8x32xf32, #tpu.memory_space<vmem>>, %arg3: memref<1x32x32xf32, #tpu.memory_space<vmem>>, %arg4: memref<1x32x32xf32, #tpu.memory_space<vmem>>, %arg5: memref<1x32x32xf32, #tpu.memory_space<vmem>>, %arg6: memref<1x32x32xf32, #tpu.memory_space<vmem>>, %arg7: memref<1x1x32xf32, #tpu.memory_space<vmem>>, %arg8: memref<1x1x32xf32, #tpu.memory_space<vmem>>, %arg9: memref<1x32x128xf32, #tpu.memory_space<vmem>>, %arg10: memref<1x1x128xf32, #tpu.memory_space<vmem>>, %arg11: memref<1x128x32xf32, #tpu.memory_space<vmem>>, %arg12: memref<1x1x32xf32, #tpu.memory_space<vmem>>, %arg13: memref<1x1x32xf32, #tpu.memory_space<vmem>>, %arg14: memref<1x1x32xf32, #tpu.memory_space<vmem>>, %arg15: memref<2x8x32xf32, #tpu.memory_space<vmem>>, %arg16: memref<16x32xf32, #tpu.memory_space<vmem>>) attributes {dimension_semantics = [#tpu.dimension_semantics<parallel>, #tpu.dimension_semantics<arbitrary>], iteration_bounds = array<i64: 1, 2>, scalar_prefetch = 0 : i64, scratch_operands = 1 : i64, tpu.core_type = #tpu.core_type<tc>, window_params = [{transform_indices = @transform_0, window_bounds = array<i64: 2, 8, 32>}, {transform_indices = @transform_1, window_bounds = array<i64: 1, 32, 32>}, {transform_indices = @transform_2, window_bounds = array<i64: 1, 32, 32>}, {transform_indices = @transform_3, window_bounds = array<i64: 1, 32, 32>}, {transform_indices = @transform_4, window_bounds = array<i64: 1, 32, 32>}, {transform_indices = @transform_5, window_bounds = array<i64: 1, 1, 32>}, {transform_indices = @transform_6, window_bounds = array<i64: 1, 1, 32>}, {transform_indices = @transform_7, window_bounds = array<i64: 1, 32, 128>}, {transform_indices = @transform_8, window_bounds = array<i64: 1, 1, 128>}, {transform_indices = @transform_9, window_bounds = array<i64: 1, 128, 32>}, {transform_indices = @transform_10, window_bounds = array<i64: 1, 1, 32>}, {transform_indices = @transform_11, window_bounds = array<i64: 1, 1, 32>}, {transform_indices = @transform_12, window_bounds = array<i64: 1, 1, 32>}, {transform_indices = @transform_13, window_bounds = array<i64: 2, 8, 32>}]} {
    %c0_i32 = arith.constant 0 : i32
    %0 = arith.cmpi eq, %arg1, %c0_i32 : i32
    %1 = arith.extui %0 : i1 to i32
    %c0_i32_0 = arith.constant 0 : i32
    %2 = arith.cmpi ne, %1, %c0_i32_0 : i32
    scf.if %2 {
      %c0_96 = arith.constant 0 : index
      %c0_97 = arith.constant 0 : index
      %c0_98 = arith.constant 0 : index
      %216 = vector.load %arg2[%c0_96, %c0_97, %c0_98] : memref<2x8x32xf32, #tpu.memory_space<vmem>>, vector<2x8x32xf32>
      %217 = vector.shape_cast %216 : vector<2x8x32xf32> to vector<16x32xf32>
      %c0_99 = arith.constant 0 : index
      %c0_100 = arith.constant 0 : index
      %218 = vector.load %arg16[%c0_99, %c0_100] : memref<16x32xf32, #tpu.memory_space<vmem>>, vector<16x32xf32>
      tpu.vector_store %arg16[%c0_99, %c0_100], %217 {strides = array<i32>} : memref<16x32xf32, #tpu.memory_space<vmem>>, vector<16x32xf32>,
    } else {
    }
    %c0 = arith.constant 0 : index
    %c0_1 = arith.constant 0 : index
    %3 = vector.load %arg16[%c0, %c0_1] : memref<16x32xf32, #tpu.memory_space<vmem>>, vector<16x32xf32>
    %c0_2 = arith.constant 0 : index
    %c0_3 = arith.constant 0 : index
    %c0_4 = arith.constant 0 : index
    %4 = vector.load %arg3[%c0_2, %c0_3, %c0_4] : memref<1x32x32xf32, #tpu.memory_space<vmem>>, vector<1x32x32xf32>
    %5 = vector.shape_cast %4 : vector<1x32x32xf32> to vector<32x32xf32>
    %cst = arith.constant dense<0.000000e+00> : vector<16x32xf32>
    %6 = tpu.matmul %3, %5, %cst {dimension_numbers = #tpu.dot_dimension_numbers<[1], [0], [0], [1], [0, 0, 1, 1], [], []>} : vector<16x32xf32>, vector<32x32xf32>, vector<16x32xf32> -> vector<16x32xf32>
    %c0_5 = arith.constant 0 : index
    %c0_6 = arith.constant 0 : index
    %c0_7 = arith.constant 0 : index
    %7 = vector.load %arg4[%c0_5, %c0_6, %c0_7] : memref<1x32x32xf32, #tpu.memory_space<vmem>>, vector<1x32x32xf32>
    %8 = vector.shape_cast %7 : vector<1x32x32xf32> to vector<32x32xf32>
    %cst_8 = arith.constant dense<0.000000e+00> : vector<16x32xf32>
    %9 = tpu.matmul %3, %8, %cst_8 {dimension_numbers = #tpu.dot_dimension_numbers<[1], [0], [0], [1], [0, 0, 1, 1], [], []>} : vector<16x32xf32>, vector<32x32xf32>, vector<16x32xf32> -> vector<16x32xf32>
    %c0_9 = arith.constant 0 : index
    %c0_10 = arith.constant 0 : index
    %c0_11 = arith.constant 0 : index
    %10 = vector.load %arg5[%c0_9, %c0_10, %c0_11] : memref<1x32x32xf32, #tpu.memory_space<vmem>>, vector<1x32x32xf32>
    %11 = vector.shape_cast %10 : vector<1x32x32xf32> to vector<32x32xf32>
    %cst_12 = arith.constant dense<0.000000e+00> : vector<16x32xf32>
    %12 = tpu.matmul %3, %11, %cst_12 {dimension_numbers = #tpu.dot_dimension_numbers<[1], [0], [0], [1], [0, 0, 1, 1], [], []>} : vector<16x32xf32>, vector<32x32xf32>, vector<16x32xf32> -> vector<16x32xf32>
    %13 = vector.shape_cast %6 : vector<16x32xf32> to vector<2x8x32xf32>
    %14 = vector.shape_cast %9 : vector<16x32xf32> to vector<2x8x32xf32>
    %15 = vector.shape_cast %12 : vector<16x32xf32> to vector<2x8x32xf32>
    %c0_13 = arith.constant 0 : index
    %c0_14 = arith.constant 0 : index
    %c0_15 = arith.constant 0 : index
    %16 = vector.load %arg6[%c0_13, %c0_14, %c0_15] : memref<1x32x32xf32, #tpu.memory_space<vmem>>, vector<1x32x32xf32>
    %17 = vector.shape_cast %16 : vector<1x32x32xf32> to vector<32x32xf32>
    %cst_16 = arith.constant 0.000000e+00 : f32
    %18 = vector.broadcast %cst_16 : f32 to vector<16x32xf32>
    %19 = vector.extract_strided_slice %13 {offsets = [0, 0, 0], sizes = [2, 8, 8], strides = [1, 1, 1]} : vector<2x8x32xf32> to vector<2x8x8xf32>
    %20 = vector.extract_strided_slice %14 {offsets = [0, 0, 0], sizes = [2, 8, 8], strides = [1, 1, 1]} : vector<2x8x32xf32> to vector<2x8x8xf32>
    %21 = vector.extract_strided_slice %15 {offsets = [0, 0, 0], sizes = [2, 8, 8], strides = [1, 1, 1]} : vector<2x8x32xf32> to vector<2x8x8xf32>
    %cst_17 = arith.constant dense<0.000000e+00> : vector<2x8x8xf32>
    %22 = tpu.matmul %19, %20, %cst_17 {dimension_numbers = #tpu.dot_dimension_numbers<[2], [2], [1], [1], [0, 0, 0, 1, 1, 1], [0], [0]>} : vector<2x8x8xf32>, vector<2x8x8xf32>, vector<2x8x8xf32> -> vector<2x8x8xf32>
    %cst_18 = arith.constant 0.353553385 : f32
    %23 = vector.broadcast %cst_18 : f32 to vector<2x8x8xf32>
    %24 = arith.mulf %22, %23 : vector<2x8x8xf32>
    %cst_19 = arith.constant dense<0xFF800000> : vector<2x8xf32>
    %25 = vector.multi_reduction <maximumf>, %24, %cst_19 [2] : vector<2x8x8xf32> to vector<2x8xf32>
    %26 = vector.shape_cast %25 : vector<2x8xf32> to vector<2x8x1xf32>
    %27 = vector.broadcast %26 : vector<2x8x1xf32> to vector<2x8x8xf32>
    %28 = arith.subf %24, %27 : vector<2x8x8xf32>
    %29 = math.exp %28 : vector<2x8x8xf32>
    %cst_20 = arith.constant dense<0.000000e+00> : vector<2x8xf32>
    %30 = vector.multi_reduction <add>, %29, %cst_20 [2] : vector<2x8x8xf32> to vector<2x8xf32>
    %31 = vector.shape_cast %30 : vector<2x8xf32> to vector<2x8x1xf32>
    %32 = tpu.reciprocal %31 {approx = true} : vector<2x8x1xf32> -> vector<2x8x1xf32>
    %33 = vector.broadcast %32 : vector<2x8x1xf32> to vector<2x8x8xf32>
    %34 = arith.mulf %29, %33 : vector<2x8x8xf32>
    %cst_21 = arith.constant dense<0.000000e+00> : vector<2x8x8xf32>
    %35 = tpu.matmul %34, %21, %cst_21 {dimension_numbers = #tpu.dot_dimension_numbers<[2], [1], [1], [2], [0, 0, 0, 1, 1, 2], [0], [0]>} : vector<2x8x8xf32>, vector<2x8x8xf32>, vector<2x8x8xf32> -> vector<2x8x8xf32>
    %36 = vector.shape_cast %35 : vector<2x8x8xf32> to vector<16x8xf32>
    %37 = vector.extract_strided_slice %17 {offsets = [0, 0], sizes = [8, 32], strides = [1, 1]} : vector<32x32xf32> to vector<8x32xf32>
    %cst_22 = arith.constant dense<0.000000e+00> : vector<16x32xf32>
    %38 = tpu.matmul %36, %37, %cst_22 {dimension_numbers = #tpu.dot_dimension_numbers<[1], [0], [0], [1], [0, 0, 1, 1], [], []>} : vector<16x8xf32>, vector<8x32xf32>, vector<16x32xf32> -> vector<16x32xf32>
    %39 = arith.addf %18, %38 : vector<16x32xf32>
    %40 = vector.extract_strided_slice %13 {offsets = [0, 0, 8], sizes = [2, 8, 8], strides = [1, 1, 1]} : vector<2x8x32xf32> to vector<2x8x8xf32>
    %41 = vector.extract_strided_slice %14 {offsets = [0, 0, 8], sizes = [2, 8, 8], strides = [1, 1, 1]} : vector<2x8x32xf32> to vector<2x8x8xf32>
    %42 = vector.extract_strided_slice %15 {offsets = [0, 0, 8], sizes = [2, 8, 8], strides = [1, 1, 1]} : vector<2x8x32xf32> to vector<2x8x8xf32>
    %cst_23 = arith.constant dense<0.000000e+00> : vector<2x8x8xf32>
    %43 = tpu.matmul %40, %41, %cst_23 {dimension_numbers = #tpu.dot_dimension_numbers<[2], [2], [1], [1], [0, 0, 0, 1, 1, 1], [0], [0]>} : vector<2x8x8xf32>, vector<2x8x8xf32>, vector<2x8x8xf32> -> vector<2x8x8xf32>
    %cst_24 = arith.constant 0.353553385 : f32
    %44 = vector.broadcast %cst_24 : f32 to vector<2x8x8xf32>
    %45 = arith.mulf %43, %44 : vector<2x8x8xf32>
    %cst_25 = arith.constant dense<0xFF800000> : vector<2x8xf32>
    %46 = vector.multi_reduction <maximumf>, %45, %cst_25 [2] : vector<2x8x8xf32> to vector<2x8xf32>
    %47 = vector.shape_cast %46 : vector<2x8xf32> to vector<2x8x1xf32>
    %48 = vector.broadcast %47 : vector<2x8x1xf32> to vector<2x8x8xf32>
    %49 = arith.subf %45, %48 : vector<2x8x8xf32>
    %50 = math.exp %49 : vector<2x8x8xf32>
    %cst_26 = arith.constant dense<0.000000e+00> : vector<2x8xf32>
    %51 = vector.multi_reduction <add>, %50, %cst_26 [2] : vector<2x8x8xf32> to vector<2x8xf32>
    %52 = vector.shape_cast %51 : vector<2x8xf32> to vector<2x8x1xf32>
    %53 = tpu.reciprocal %52 {approx = true} : vector<2x8x1xf32> -> vector<2x8x1xf32>
    %54 = vector.broadcast %53 : vector<2x8x1xf32> to vector<2x8x8xf32>
    %55 = arith.mulf %50, %54 : vector<2x8x8xf32>
    %cst_27 = arith.constant dense<0.000000e+00> : vector<2x8x8xf32>
    %56 = tpu.matmul %55, %42, %cst_27 {dimension_numbers = #tpu.dot_dimension_numbers<[2], [1], [1], [2], [0, 0, 0, 1, 1, 2], [0], [0]>} : vector<2x8x8xf32>, vector<2x8x8xf32>, vector<2x8x8xf32> -> vector<2x8x8xf32>
    %57 = vector.shape_cast %56 : vector<2x8x8xf32> to vector<16x8xf32>
    %58 = vector.extract_strided_slice %17 {offsets = [8, 0], sizes = [8, 32], strides = [1, 1]} : vector<32x32xf32> to vector<8x32xf32>
    %cst_28 = arith.constant dense<0.000000e+00> : vector<16x32xf32>
    %59 = tpu.matmul %57, %58, %cst_28 {dimension_numbers = #tpu.dot_dimension_numbers<[1], [0], [0], [1], [0, 0, 1, 1], [], []>} : vector<16x8xf32>, vector<8x32xf32>, vector<16x32xf32> -> vector<16x32xf32>
    %60 = arith.addf %39, %59 : vector<16x32xf32>
    %61 = vector.extract_strided_slice %13 {offsets = [0, 0, 16], sizes = [2, 8, 8], strides = [1, 1, 1]} : vector<2x8x32xf32> to vector<2x8x8xf32>
    %62 = vector.extract_strided_slice %14 {offsets = [0, 0, 16], sizes = [2, 8, 8], strides = [1, 1, 1]} : vector<2x8x32xf32> to vector<2x8x8xf32>
    %63 = vector.extract_strided_slice %15 {offsets = [0, 0, 16], sizes = [2, 8, 8], strides = [1, 1, 1]} : vector<2x8x32xf32> to vector<2x8x8xf32>
    %cst_29 = arith.constant dense<0.000000e+00> : vector<2x8x8xf32>
    %64 = tpu.matmul %61, %62, %cst_29 {dimension_numbers = #tpu.dot_dimension_numbers<[2], [2], [1], [1], [0, 0, 0, 1, 1, 1], [0], [0]>} : vector<2x8x8xf32>, vector<2x8x8xf32>, vector<2x8x8xf32> -> vector<2x8x8xf32>
    %cst_30 = arith.constant 0.353553385 : f32
    %65 = vector.broadcast %cst_30 : f32 to vector<2x8x8xf32>
    %66 = arith.mulf %64, %65 : vector<2x8x8xf32>
    %cst_31 = arith.constant dense<0xFF800000> : vector<2x8xf32>
    %67 = vector.multi_reduction <maximumf>, %66, %cst_31 [2] : vector<2x8x8xf32> to vector<2x8xf32>
    %68 = vector.shape_cast %67 : vector<2x8xf32> to vector<2x8x1xf32>
    %69 = vector.broadcast %68 : vector<2x8x1xf32> to vector<2x8x8xf32>
    %70 = arith.subf %66, %69 : vector<2x8x8xf32>
    %71 = math.exp %70 : vector<2x8x8xf32>
    %cst_32 = arith.constant dense<0.000000e+00> : vector<2x8xf32>
    %72 = vector.multi_reduction <add>, %71, %cst_32 [2] : vector<2x8x8xf32> to vector<2x8xf32>
    %73 = vector.shape_cast %72 : vector<2x8xf32> to vector<2x8x1xf32>
    %74 = tpu.reciprocal %73 {approx = true} : vector<2x8x1xf32> -> vector<2x8x1xf32>
    %75 = vector.broadcast %74 : vector<2x8x1xf32> to vector<2x8x8xf32>
    %76 = arith.mulf %71, %75 : vector<2x8x8xf32>
    %cst_33 = arith.constant dense<0.000000e+00> : vector<2x8x8xf32>
    %77 = tpu.matmul %76, %63, %cst_33 {dimension_numbers = #tpu.dot_dimension_numbers<[2], [1], [1], [2], [0, 0, 0, 1, 1, 2], [0], [0]>} : vector<2x8x8xf32>, vector<2x8x8xf32>, vector<2x8x8xf32> -> vector<2x8x8xf32>
    %78 = vector.shape_cast %77 : vector<2x8x8xf32> to vector<16x8xf32>
    %79 = vector.extract_strided_slice %17 {offsets = [16, 0], sizes = [8, 32], strides = [1, 1]} : vector<32x32xf32> to vector<8x32xf32>
    %cst_34 = arith.constant dense<0.000000e+00> : vector<16x32xf32>
    %80 = tpu.matmul %78, %79, %cst_34 {dimension_numbers = #tpu.dot_dimension_numbers<[1], [0], [0], [1], [0, 0, 1, 1], [], []>} : vector<16x8xf32>, vector<8x32xf32>, vector<16x32xf32> -> vector<16x32xf32>
    %81 = arith.addf %60, %80 : vector<16x32xf32>
    %82 = vector.extract_strided_slice %13 {offsets = [0, 0, 24], sizes = [2, 8, 8], strides = [1, 1, 1]} : vector<2x8x32xf32> to vector<2x8x8xf32>
    %83 = vector.extract_strided_slice %14 {offsets = [0, 0, 24], sizes = [2, 8, 8], strides = [1, 1, 1]} : vector<2x8x32xf32> to vector<2x8x8xf32>
    %84 = vector.extract_strided_slice %15 {offsets = [0, 0, 24], sizes = [2, 8, 8], strides = [1, 1, 1]} : vector<2x8x32xf32> to vector<2x8x8xf32>
    %cst_35 = arith.constant dense<0.000000e+00> : vector<2x8x8xf32>
    %85 = tpu.matmul %82, %83, %cst_35 {dimension_numbers = #tpu.dot_dimension_numbers<[2], [2], [1], [1], [0, 0, 0, 1, 1, 1], [0], [0]>} : vector<2x8x8xf32>, vector<2x8x8xf32>, vector<2x8x8xf32> -> vector<2x8x8xf32>
    %cst_36 = arith.constant 0.353553385 : f32
    %86 = vector.broadcast %cst_36 : f32 to vector<2x8x8xf32>
    %87 = arith.mulf %85, %86 : vector<2x8x8xf32>
    %cst_37 = arith.constant dense<0xFF800000> : vector<2x8xf32>
    %88 = vector.multi_reduction <maximumf>, %87, %cst_37 [2] : vector<2x8x8xf32> to vector<2x8xf32>
    %89 = vector.shape_cast %88 : vector<2x8xf32> to vector<2x8x1xf32>
    %90 = vector.broadcast %89 : vector<2x8x1xf32> to vector<2x8x8xf32>
    %91 = arith.subf %87, %90 : vector<2x8x8xf32>
    %92 = math.exp %91 : vector<2x8x8xf32>
    %cst_38 = arith.constant dense<0.000000e+00> : vector<2x8xf32>
    %93 = vector.multi_reduction <add>, %92, %cst_38 [2] : vector<2x8x8xf32> to vector<2x8xf32>
    %94 = vector.shape_cast %93 : vector<2x8xf32> to vector<2x8x1xf32>
    %95 = tpu.reciprocal %94 {approx = true} : vector<2x8x1xf32> -> vector<2x8x1xf32>
    %96 = vector.broadcast %95 : vector<2x8x1xf32> to vector<2x8x8xf32>
    %97 = arith.mulf %92, %96 : vector<2x8x8xf32>
    %cst_39 = arith.constant dense<0.000000e+00> : vector<2x8x8xf32>
    %98 = tpu.matmul %97, %84, %cst_39 {dimension_numbers = #tpu.dot_dimension_numbers<[2], [1], [1], [2], [0, 0, 0, 1, 1, 2], [0], [0]>} : vector<2x8x8xf32>, vector<2x8x8xf32>, vector<2x8x8xf32> -> vector<2x8x8xf32>
    %99 = vector.shape_cast %98 : vector<2x8x8xf32> to vector<16x8xf32>
    %100 = vector.extract_strided_slice %17 {offsets = [24, 0], sizes = [8, 32], strides = [1, 1]} : vector<32x32xf32> to vector<8x32xf32>
    %cst_40 = arith.constant dense<0.000000e+00> : vector<16x32xf32>
    %101 = tpu.matmul %99, %100, %cst_40 {dimension_numbers = #tpu.dot_dimension_numbers<[1], [0], [0], [1], [0, 0, 1, 1], [], []>} : vector<16x8xf32>, vector<8x32xf32>, vector<16x32xf32> -> vector<16x32xf32>
    %102 = arith.addf %81, %101 : vector<16x32xf32>
    %103 = arith.addf %3, %102 : vector<16x32xf32>
    %c0_41 = arith.constant 0 : index
    %c0_42 = arith.constant 0 : index
    %c0_43 = arith.constant 0 : index
    %104 = vector.load %arg7[%c0_41, %c0_42, %c0_43] : memref<1x1x32xf32, #tpu.memory_space<vmem>>, vector<1x1x32xf32>
    %105 = vector.shape_cast %104 : vector<1x1x32xf32> to vector<1x32xf32>
    %c0_44 = arith.constant 0 : index
    %c0_45 = arith.constant 0 : index
    %c0_46 = arith.constant 0 : index
    %106 = vector.load %arg8[%c0_44, %c0_45, %c0_46] : memref<1x1x32xf32, #tpu.memory_space<vmem>>, vector<1x1x32xf32>
    %107 = vector.shape_cast %106 : vector<1x1x32xf32> to vector<1x32xf32>
    %cst_47 = arith.constant dense<0.000000e+00> : vector<16xf32>
    %108 = vector.multi_reduction <add>, %103, %cst_47 [1] : vector<16x32xf32> to vector<16xf32>
    %109 = vector.shape_cast %108 : vector<16xf32> to vector<16x1xf32>
    %cst_48 = arith.constant 3.200000e+01 : f32
    %110 = vector.broadcast %cst_48 : f32 to vector<16x1xf32>
    %111 = arith.divf %109, %110 : vector<16x1xf32>
    %112 = vector.broadcast %111 : vector<16x1xf32> to vector<16x32xf32>
    %113 = arith.subf %103, %112 : vector<16x32xf32>
    %114 = arith.mulf %113, %113 : vector<16x32xf32>
    %cst_49 = arith.constant dense<0.000000e+00> : vector<16xf32>
    %115 = vector.multi_reduction <add>, %114, %cst_49 [1] : vector<16x32xf32> to vector<16xf32>
    %116 = vector.shape_cast %115 : vector<16xf32> to vector<16x1xf32>
    %cst_50 = arith.constant 3.200000e+01 : f32
    %117 = vector.broadcast %cst_50 : f32 to vector<16x1xf32>
    %118 = arith.divf %116, %117 : vector<16x1xf32>
    %119 = vector.broadcast %111 : vector<16x1xf32> to vector<16x32xf32>
    %120 = arith.subf %103, %119 : vector<16x32xf32>
    %cst_51 = arith.constant 9.99999974E-6 : f32
    %121 = vector.broadcast %cst_51 : f32 to vector<16x1xf32>
    %122 = arith.addf %118, %121 : vector<16x1xf32>
    %123 = math.rsqrt %122 : vector<16x1xf32>
    %124 = vector.broadcast %123 : vector<16x1xf32> to vector<16x32xf32>
    %125 = arith.mulf %120, %124 : vector<16x32xf32>
    %126 = vector.broadcast %105 : vector<1x32xf32> to vector<16x32xf32>
    %127 = arith.mulf %125, %126 : vector<16x32xf32>
    %128 = vector.broadcast %107 : vector<1x32xf32> to vector<16x32xf32>
    %129 = arith.addf %127, %128 : vector<16x32xf32>
    %c0_52 = arith.constant 0 : index
    %c0_53 = arith.constant 0 : index
    %c0_54 = arith.constant 0 : index
    %130 = vector.load %arg9[%c0_52, %c0_53, %c0_54] : memref<1x32x128xf32, #tpu.memory_space<vmem>>, vector<1x32x128xf32>
    %131 = vector.shape_cast %130 : vector<1x32x128xf32> to vector<32x128xf32>
    %cst_55 = arith.constant dense<0.000000e+00> : vector<16x128xf32>
    %132 = tpu.matmul %129, %131, %cst_55 {dimension_numbers = #tpu.dot_dimension_numbers<[1], [0], [0], [1], [0, 0, 1, 1], [], []>} : vector<16x32xf32>, vector<32x128xf32>, vector<16x128xf32> -> vector<16x128xf32>
    %c0_56 = arith.constant 0 : index
    %c0_57 = arith.constant 0 : index
    %c0_58 = arith.constant 0 : index
    %133 = vector.load %arg10[%c0_56, %c0_57, %c0_58] : memref<1x1x128xf32, #tpu.memory_space<vmem>>, vector<1x1x128xf32>
    %134 = vector.shape_cast %133 : vector<1x1x128xf32> to vector<1x128xf32>
    %135 = vector.broadcast %134 : vector<1x128xf32> to vector<16x128xf32>
    %136 = arith.addf %132, %135 : vector<16x128xf32>
    %cst_59 = arith.constant 5.000000e-01 : f32
    %137 = vector.broadcast %cst_59 : f32 to vector<16x128xf32>
    %138 = arith.mulf %137, %136 : vector<16x128xf32>
    %cst_60 = arith.constant 0.707106769 : f32
    %139 = vector.broadcast %cst_60 : f32 to vector<16x128xf32>
    %140 = arith.mulf %136, %139 : vector<16x128xf32>
    %cst_61 = arith.constant 0.000000e+00 : f32
    %141 = vector.broadcast %cst_61 : f32 to vector<16x128xf32>
    %142 = arith.cmpf olt, %140, %141 : vector<16x128xf32>
    %cst_62 = arith.constant -1.000000e+00 : f32
    %cst_63 = arith.constant 1.000000e+00 : f32
    %143 = vector.broadcast %cst_62 : f32 to vector<16x128xf32>
    %144 = vector.broadcast %cst_63 : f32 to vector<16x128xf32>
    %145 = arith.select %142, %143, %144 : vector<16x128xi1>, vector<16x128xf32>
    %146 = math.absf %140 : vector<16x128xf32>
    %cst_64 = arith.constant 0.327591091 : f32
    %147 = vector.broadcast %cst_64 : f32 to vector<16x128xf32>
    %148 = arith.mulf %147, %146 : vector<16x128xf32>
    %cst_65 = arith.constant 1.000000e+00 : f32
    %149 = vector.broadcast %cst_65 : f32 to vector<16x128xf32>
    %150 = arith.addf %149, %148 : vector<16x128xf32>
    %cst_66 = arith.constant 1.000000e+00 : f32
    %151 = vector.broadcast %cst_66 : f32 to vector<16x128xf32>
    %152 = arith.divf %151, %150 : vector<16x128xf32>
    %cst_67 = arith.constant 1.06140542 : f32
    %153 = vector.broadcast %cst_67 : f32 to vector<16x128xf32>
    %154 = arith.mulf %153, %152 : vector<16x128xf32>
    %cst_68 = arith.constant -1.45315206 : f32
    %155 = vector.broadcast %cst_68 : f32 to vector<16x128xf32>
    %156 = arith.addf %154, %155 : vector<16x128xf32>
    %157 = arith.mulf %156, %152 : vector<16x128xf32>
    %cst_69 = arith.constant 1.42141378 : f32
    %158 = vector.broadcast %cst_69 : f32 to vector<16x128xf32>
    %159 = arith.addf %157, %158 : vector<16x128xf32>
    %160 = arith.mulf %159, %152 : vector<16x128xf32>
    %cst_70 = arith.constant -0.284496725 : f32
    %161 = vector.broadcast %cst_70 : f32 to vector<16x128xf32>
    %162 = arith.addf %160, %161 : vector<16x128xf32>
    %163 = arith.mulf %162, %152 : vector<16x128xf32>
    %cst_71 = arith.constant 0.254829586 : f32
    %164 = vector.broadcast %cst_71 : f32 to vector<16x128xf32>
    %165 = arith.addf %163, %164 : vector<16x128xf32>
    %166 = arith.mulf %165, %152 : vector<16x128xf32>
    %cst_72 = arith.constant 0.000000e+00 : f32
    %167 = vector.broadcast %cst_72 : f32 to vector<16x128xf32>
    %168 = arith.subf %167, %146 : vector<16x128xf32>
    %169 = arith.mulf %168, %146 : vector<16x128xf32>
    %170 = math.exp %169 : vector<16x128xf32>
    %171 = arith.mulf %166, %170 : vector<16x128xf32>
    %cst_73 = arith.constant 1.000000e+00 : f32
    %172 = vector.broadcast %cst_73 : f32 to vector<16x128xf32>
    %173 = arith.subf %172, %171 : vector<16x128xf32>
    %174 = arith.mulf %145, %173 : vector<16x128xf32>
    %cst_74 = arith.constant 1.000000e+00 : f32
    %175 = vector.broadcast %cst_74 : f32 to vector<16x128xf32>
    %176 = arith.addf %175, %174 : vector<16x128xf32>
    %177 = arith.mulf %138, %176 : vector<16x128xf32>
    %c0_75 = arith.constant 0 : index
    %c0_76 = arith.constant 0 : index
    %c0_77 = arith.constant 0 : index
    %178 = vector.load %arg11[%c0_75, %c0_76, %c0_77] : memref<1x128x32xf32, #tpu.memory_space<vmem>>, vector<1x128x32xf32>
    %179 = vector.shape_cast %178 : vector<1x128x32xf32> to vector<128x32xf32>
    %cst_78 = arith.constant dense<0.000000e+00> : vector<16x32xf32>
    %180 = tpu.matmul %177, %179, %cst_78 {dimension_numbers = #tpu.dot_dimension_numbers<[1], [0], [0], [1], [0, 0, 1, 1], [], []>} : vector<16x128xf32>, vector<128x32xf32>, vector<16x32xf32> -> vector<16x32xf32>
    %c0_79 = arith.constant 0 : index
    %c0_80 = arith.constant 0 : index
    %c0_81 = arith.constant 0 : index
    %181 = vector.load %arg12[%c0_79, %c0_80, %c0_81] : memref<1x1x32xf32, #tpu.memory_space<vmem>>, vector<1x1x32xf32>
    %182 = vector.shape_cast %181 : vector<1x1x32xf32> to vector<1x32xf32>
    %183 = vector.broadcast %182 : vector<1x32xf32> to vector<16x32xf32>
    %184 = arith.addf %180, %183 : vector<16x32xf32>
    %185 = arith.addf %129, %184 : vector<16x32xf32>
    %c0_82 = arith.constant 0 : index
    %c0_83 = arith.constant 0 : index
    %c0_84 = arith.constant 0 : index
    %186 = vector.load %arg13[%c0_82, %c0_83, %c0_84] : memref<1x1x32xf32, #tpu.memory_space<vmem>>, vector<1x1x32xf32>
    %187 = vector.shape_cast %186 : vector<1x1x32xf32> to vector<1x32xf32>
    %c0_85 = arith.constant 0 : index
    %c0_86 = arith.constant 0 : index
    %c0_87 = arith.constant 0 : index
    %188 = vector.load %arg14[%c0_85, %c0_86, %c0_87] : memref<1x1x32xf32, #tpu.memory_space<vmem>>, vector<1x1x32xf32>
    %189 = vector.shape_cast %188 : vector<1x1x32xf32> to vector<1x32xf32>
    %cst_88 = arith.constant dense<0.000000e+00> : vector<16xf32>
    %190 = vector.multi_reduction <add>, %185, %cst_88 [1] : vector<16x32xf32> to vector<16xf32>
    %191 = vector.shape_cast %190 : vector<16xf32> to vector<16x1xf32>
    %cst_89 = arith.constant 3.200000e+01 : f32
    %192 = vector.broadcast %cst_89 : f32 to vector<16x1xf32>
    %193 = arith.divf %191, %192 : vector<16x1xf32>
    %194 = vector.broadcast %193 : vector<16x1xf32> to vector<16x32xf32>
    %195 = arith.subf %185, %194 : vector<16x32xf32>
    %196 = arith.mulf %195, %195 : vector<16x32xf32>
    %cst_90 = arith.constant dense<0.000000e+00> : vector<16xf32>
    %197 = vector.multi_reduction <add>, %196, %cst_90 [1] : vector<16x32xf32> to vector<16xf32>
    %198 = vector.shape_cast %197 : vector<16xf32> to vector<16x1xf32>
    %cst_91 = arith.constant 3.200000e+01 : f32
    %199 = vector.broadcast %cst_91 : f32 to vector<16x1xf32>
    %200 = arith.divf %198, %199 : vector<16x1xf32>
    %201 = vector.broadcast %193 : vector<16x1xf32> to vector<16x32xf32>
    %202 = arith.subf %185, %201 : vector<16x32xf32>
    %cst_92 = arith.constant 9.99999974E-6 : f32
    %203 = vector.broadcast %cst_92 : f32 to vector<16x1xf32>
    %204 = arith.addf %200, %203 : vector<16x1xf32>
    %205 = math.rsqrt %204 : vector<16x1xf32>
    %206 = vector.broadcast %205 : vector<16x1xf32> to vector<16x32xf32>
    %207 = arith.mulf %202, %206 : vector<16x32xf32>
    %208 = vector.broadcast %187 : vector<1x32xf32> to vector<16x32xf32>
    %209 = arith.mulf %207, %208 : vector<16x32xf32>
    %210 = vector.broadcast %189 : vector<1x32xf32> to vector<16x32xf32>
    %211 = arith.addf %209, %210 : vector<16x32xf32>
    %c0_93 = arith.constant 0 : index
    %c0_94 = arith.constant 0 : index
    %212 = vector.load %arg16[%c0_93, %c0_94] : memref<16x32xf32, #tpu.memory_space<vmem>>, vector<16x32xf32>
    tpu.vector_store %arg16[%c0_93, %c0_94], %211 {strides = array<i32>} : memref<16x32xf32, #tpu.memory_space<vmem>>, vector<16x32xf32>,
    %c1_i32 = arith.constant 1 : i32
    %213 = arith.cmpi eq, %arg1, %c1_i32 : i32
    %214 = arith.extui %213 : i1 to i32
    %c0_i32_95 = arith.constant 0 : i32
    %215 = arith.cmpi ne, %214, %c0_i32_95 : i32
    scf.if %215 {
      %216 = vector.shape_cast %211 : vector<16x32xf32> to vector<2x8x32xf32>
      %c0_96 = arith.constant 0 : index
      %c0_97 = arith.constant 0 : index
      %c0_98 = arith.constant 0 : index
      %217 = vector.load %arg15[%c0_96, %c0_97, %c0_98] : memref<2x8x32xf32, #tpu.memory_space<vmem>>, vector<2x8x32xf32>
      tpu.vector_store %arg15[%c0_96, %c0_97, %c0_98], %216 {strides = array<i32>} : memref<2x8x32xf32, #tpu.memory_space<vmem>>, vector<2x8x32xf32>,
    } else {
    }
    return
  }
  func.func @transform_0(%arg0: i32, %arg1: i32) -> (i32, i32, i32) {
    %c0_i32 = arith.constant 0 : i32
    %c0_i32_0 = arith.constant 0 : i32
    %c0_i32_1 = arith.constant 0 : i32
    return %arg0, %c0_i32, %c0_i32_0 : i32, i32, i32
  }
  func.func @transform_1(%arg0: i32, %arg1: i32) -> (i32, i32, i32) {
    %c0_i32 = arith.constant 0 : i32
    %c0_i32_0 = arith.constant 0 : i32
    %c0_i32_1 = arith.constant 0 : i32
    return %arg1, %c0_i32, %c0_i32_0 : i32, i32, i32
  }
  func.func @transform_2(%arg0: i32, %arg1: i32) -> (i32, i32, i32) {
    %c0_i32 = arith.constant 0 : i32
    %c0_i32_0 = arith.constant 0 : i32
    %c0_i32_1 = arith.constant 0 : i32
    return %arg1, %c0_i32, %c0_i32_0 : i32, i32, i32
  }
  func.func @transform_3(%arg0: i32, %arg1: i32) -> (i32, i32, i32) {
    %c0_i32 = arith.constant 0 : i32
    %c0_i32_0 = arith.constant 0 : i32
    %c0_i32_1 = arith.constant 0 : i32
    return %arg1, %c0_i32, %c0_i32_0 : i32, i32, i32
  }
  func.func @transform_4(%arg0: i32, %arg1: i32) -> (i32, i32, i32) {
    %c0_i32 = arith.constant 0 : i32
    %c0_i32_0 = arith.constant 0 : i32
    %c0_i32_1 = arith.constant 0 : i32
    return %arg1, %c0_i32, %c0_i32_0 : i32, i32, i32
  }
  func.func @transform_5(%arg0: i32, %arg1: i32) -> (i32, i32, i32) {
    %c0_i32 = arith.constant 0 : i32
    %c0_i32_0 = arith.constant 0 : i32
    %c0_i32_1 = arith.constant 0 : i32
    return %arg1, %c0_i32, %c0_i32_0 : i32, i32, i32
  }
  func.func @transform_6(%arg0: i32, %arg1: i32) -> (i32, i32, i32) {
    %c0_i32 = arith.constant 0 : i32
    %c0_i32_0 = arith.constant 0 : i32
    %c0_i32_1 = arith.constant 0 : i32
    return %arg1, %c0_i32, %c0_i32_0 : i32, i32, i32
  }
  func.func @transform_7(%arg0: i32, %arg1: i32) -> (i32, i32, i32) {
    %c0_i32 = arith.constant 0 : i32
    %c0_i32_0 = arith.constant 0 : i32
    %c0_i32_1 = arith.constant 0 : i32
    return %arg1, %c0_i32, %c0_i32_0 : i32, i32, i32
  }
  func.func @transform_8(%arg0: i32, %arg1: i32) -> (i32, i32, i32) {
    %c0_i32 = arith.constant 0 : i32
    %c0_i32_0 = arith.constant 0 : i32
    %c0_i32_1 = arith.constant 0 : i32
    return %arg1, %c0_i32, %c0_i32_0 : i32, i32, i32
  }
  func.func @transform_9(%arg0: i32, %arg1: i32) -> (i32, i32, i32) {
    %c0_i32 = arith.constant 0 : i32
    %c0_i32_0 = arith.constant 0 : i32
    %c0_i32_1 = arith.constant 0 : i32
    return %arg1, %c0_i32, %c0_i32_0 : i32, i32, i32
  }
  func.func @transform_10(%arg0: i32, %arg1: i32) -> (i32, i32, i32) {
    %c0_i32 = arith.constant 0 : i32
    %c0_i32_0 = arith.constant 0 : i32
    %c0_i32_1 = arith.constant 0 : i32
    return %arg1, %c0_i32, %c0_i32_0 : i32, i32, i32
  }
  func.func @transform_11(%arg0: i32, %arg1: i32) -> (i32, i32, i32) {
    %c0_i32 = arith.constant 0 : i32
    %c0_i32_0 = arith.constant 0 : i32
    %c0_i32_1 = arith.constant 0 : i32
    return %arg1, %c0_i32, %c0_i32_0 : i32, i32, i32
  }
  func.func @transform_12(%arg0: i32, %arg1: i32) -> (i32, i32, i32) {
    %c0_i32 = arith.constant 0 : i32
    %c0_i32_0 = arith.constant 0 : i32
    %c0_i32_1 = arith.constant 0 : i32
    return %arg1, %c0_i32, %c0_i32_0 : i32, i32, i32
  }
  func.func @transform_13(%arg0: i32, %arg1: i32) -> (i32, i32, i32) {
    %c0_i32 = arith.constant 0 : i32
    %c0_i32_0 = arith.constant 0 : i32
    %c0_i32_1 = arith.constant 0 : i32
    return %arg0, %c0_i32, %c0_i32_0 : i32, i32, i32
  }
}

</mosaic_0001>

<bundles_post_ra>
// kernel: tpu_custom_call.1
= control target key start
LH: loop header
LB: loop body
LE: loop exit
PB: predicated region body
PF: predicated region fallthrough
CT: control target
= control target key end

     0   :  { %s4191_s0 = inlined_call_operand.hbm [shape: f32[2,8,32], index: 0, kind: input, shape index: {}]   ;;  %s4192_s1 = inlined_call_operand.vmem [shape: f32[2,32,32], index: 1, kind: input, shape index: {}]   ;;  %s4193_s2 = inlined_call_operand.vmem [shape: f32[2,32,32], index: 2, kind: input, shape index: {}]   ;;  %s4194_s3 = inlined_call_operand.vmem [shape: f32[2,32,32], index: 3, kind: input, shape index: {}]   ;;  %s4195_s4 = inlined_call_operand.vmem [shape: f32[2,32,32], index: 4, kind: input, shape index: {}]   ;;  %s4196_s5 = inlined_call_operand.vmem [shape: f32[2,1,32], index: 5, kind: input, shape index: {}]   ;;  %s4197_s6 = inlined_call_operand.vmem [shape: f32[2,1,32], index: 6, kind: input, shape index: {}]   ;;  %s4198_s7 = inlined_call_operand.vmem [shape: f32[2,32,128], index: 7, kind: input, shape index: {}]   ;;  %s4199_s8 = inlined_call_operand.vmem [shape: f32[2,1,128], index: 8, kind: input, shape index: {}]   ;;  %s4200_s9 = inlined_call_operand.vmem [shape: f32[2,128,32], index: 9, kind: input, shape index: {}]   ;;  %s4201_s10 = inlined_call_operand.vmem [shape: f32[2,1,32], index: 10, kind: input, shape index: {}]   ;;  %s4202_s11 = inlined_call_operand.vmem [shape: f32[2,1,32], index: 11, kind: input, shape index: {}]   ;;  %s4203_s12 = inlined_call_operand.vmem [shape: f32[2,1,32], index: 12, kind: input, shape index: {}]   ;;  %s4204_s13 = inlined_call_operand.hbm [shape: f32[2,8,32], index: 13, kind: output, shape index: {}]  }
   0x1   :  { %4211 = sst [smem:[#allocation11_spill]] %s4191_s0 }
   0x2   :  { %4212 = sst [smem:[#allocation12_spill]] %s4192_s1 }
   0x3   :  { %4213 = sst [smem:[#allocation13_spill]] %s4193_s2 }
   0x4   :  { %4214 = sst [smem:[#allocation14_spill]] %s4194_s3 }
   0x5   :  { %4215 = sst [smem:[#allocation15_spill]] %s4195_s4 }
   0x6   :  { %4216 = sst [smem:[#allocation16_spill]] %s4198_s7 }
   0x7   :  { %4217 = sst [smem:[#allocation17_spill]] %s4204_s13 }
   0x8   :  { %18 = vsyncpa [#allocation4], 0 }
   0x9   :  { %19 = vsyncpa [#allocation5], 0  ;;  %s3775_s25 = smov 0   ;;  %s3777_s26 = smov 0  }
   0xa   :  { %s3779_s27 = smov 0  }
   0xb LB: > { %4218 = sst [smem:[#allocation9_spill]] %s3687_s26  ;;  %s4208_s28 = sadd.s32 4294967295, %s3691_s27   ;;  %s3691_s27 = sphi %s3779_s27, %s25_s27   ;;  %s3687_s26 = sphi %s3777_s26, %s4237_s26   ;;  %s3683_s25 = sphi %s3775_s25, %s4236_s25  }
   0xc   : > { %s34_s29 = sadd.s32 1, %s3687_s26  ;;  %p3097_p1 = scmp.ge.s32.totalorder %s3691_s27, 1 }
   0xd   : > { %p35_p0 = scmp.ge.s32.totalorder %s34_s29, 2  ;;  %p406_p2 = scmp.lt.s32.totalorder %s3691_s27, 3 }
   0xe   : > { %p3802_p4 = scmp.eq.s32.totalorder %s4208_s28, 0  ;;  %s3693_s15 = smov [#allocation3]  }
   0xf   : > { %s4239_s29 = smov (%p35_p0, %s34_s29), 0  ;;  %p3796_p3 = pnand %p3097_p1, %p406_p2 }
  0x10   : > { %4219 = sst [smem:[#allocation10_spill]] %s4239_s29  ;;  %s421_s16 = sshll.u32 %s3693_s15, 4  ;;  %s422_s16 = int_to_ptr.vmem [resolvable:$true] %s421_s16 }
  0x11   : > { %s4220_s30 = scalar_select %p3796_p3, 1, 0 }
  0x12   : > { %s4221_s14 = scalar_select %p3802_p4, 1, 0 }
  0x13   : > { %p3515_p5 = pneg %p3796_p3  ;;  %s4223_s0 = sld [smem:[#allocation11_spill]] }
  0x15   : > { %p3810_p6 = pnand %p3802_p4, %p3515_p5 }
  0x17   : > { %p3609_p8 = pneg %p3810_p6 }
  0x19   : > { %s3607_s20 = scalar_lea.hbm %s4223_s0, 256 }
  0x1a   : > { %p3608_p7 = scmp.ne.s32.totalorder %s4223_s0, %s3607_s20  ;;  %p3614_p11 = scmp.lt.u32.totalorder %s3607_s20, %s4223_s0 }
  0x1c   : > { %p3610_p9 = pnand %p3609_p8, %p3608_p7 }
  0x1e   : > { %p3611_p10 = pneg %p3610_p9 }
  0x20   : > { %p3616_p12 = pnand %p3614_p11, %p3611_p10 }
  0x22   : > { %3619 = shalt.err (!%p3616_p12)
}
  0x23   : > { %s3620_s15 = scalar_lea.vmem %s422_s16, 256  ;;  %p3628_p2 = scmp.lt.s32.totalorder %s422_s16, %s422_s16 }
  0x24   : > { %p3621_p13 = scmp.ne.s32.totalorder %s422_s16, %s3620_s15  ;;  %p3629_p5 = scmp.lt.s32.totalorder %s3620_s15, %s3620_s15 }
  0x26   : > { %p3623_p0 = pnand %p3621_p13, %p3609_p8  ;;  %p3630_p4 = por %p3629_p5, %p3628_p2 }
  0x28   : > { %p3624_p1 = pneg %p3623_p0 }
  0x2a   : > { %p3631_p3 = pnand %p3630_p4, %p3624_p1 }
  0x2c   : > { %3634 = shalt.err (!%p3631_p3)
}
  0x2d   : > { %s3694_s18 = smov 128   ;;  %s3695_s19 = smov 8  }
  0x2e   : > { %3518 = dma.hbm_to_vmem [thread:$0]  (!%p3810_p6), %s4223_s0, 256, %s422_s16, [#allocation4], %s3694_s18, %s3694_s18, %s3695_s19  }
  0x2f   : > { %p4224_p7 = scmp.ne.s32.totalorder %s4220_s30, 0 }
  0x30   : > { %p4225_p9 = scmp.ne.s32.totalorder (!%p4224_p7), %s4221_s14, 0 }
  0x31   : > { %521 = sbr.rel (%p4224_p7) target bundleno = 4223 (0x107f), region = 72 }
  0x38   : > { %3674 = dma.done.wait (%p4225_p9), [#allocation4], 256  }
  0x39   : > { %3676 = vsyncadd (%p4225_p9), [#allocation4], 4294967040  ;;  %p604_p3 = scmp.lt.s32.totalorder %s3683_s25, 1  ;;  %s4226_s1 = sld [smem:[#allocation12_spill]] }
  0x3a   : > { %s4227_s2 = sld [smem:[#allocation13_spill]]  ;;  %s4228_s3 = sld [smem:[#allocation14_spill]] }
  0x3b   : > { %s3838_s20 = scalar_select %p604_p3, %s3683_s25, 1 }
  0x3c   : > { %s4229_s4 = sld [smem:[#allocation15_spill]]  ;;  %s4230_s7 = sld [smem:[#allocation16_spill]] }
  0x3d   : > { %s3166_s30 = sshll.u32 %s3838_s20, 5  ;;  %s637_s28 = scalar_lea.vmem %s4199_s8, %s3838_s20 }
  0x3e   : > { %s3171_s22 = sshll.u32 %s3838_s20, 7  ;;  %s645_s16 = scalar_lea.vmem %s4201_s10, %s3838_s20 }
  0x3f   : > { %s608_s15 = scalar_lea.vmem %s4226_s1, %s3166_s30  ;;  %s3880_s26 = scalar_lea.vmem %s4200_s9, %s3171_s22 }
  0x40   : > { %s3851_s21 = scalar_lea.vmem %s4227_s2, %s3166_s30  ;;  %s3856_s0 = scalar_lea.vmem %s4228_s3, %s3166_s30 }
  0x41   : > { %s648_s23 = scalar_lea.vmem %s4202_s11, %s3838_s20  ;;  %p3114_p4 = scmp.ne.s32.totalorder %s3683_s25, 0 }
  0x42   : > { %s3861_s13 = scalar_lea.vmem %s4229_s4, %s3166_s30  ;;  %s3870_s18 = scalar_lea.vmem %s4230_s7, %s3166_s30  ;;  %v657_v0 = vld [vmem:[#allocation3] sm:$0xff] (!%p3114_p4)  ;;  %vm659_vm0 = vcmask (!%p3114_p4), 261120   ;;  %v658_v1 = vld [vmem:[#allocation3 + $0x8] sm:$0xff] (!%p3114_p4) }
  0x43   : > { %s651_s7 = scalar_lea.vmem %s4203_s12, %s3838_s20  ;;  %656 = sbr.rel (%p3114_p4) target bundleno = 74 (0x4a), region = 80  ;;  %660 = vst.msk [vmem:[#allocation2] sm:$0xff] (!%p3114_p4), %vm659_vm0, %v657_v0  ;;  %661 = vst.msk [vmem:[#allocation2 + $0x8] sm:$0xff] (!%p3114_p4), %vm659_vm0, %v658_v1 }
  0x4a PF: > { %v664_v2 = vld [vmem:[%s608_s15] sm:$0xff]  ;;  %v665_v3 = vld [vmem:[%s608_s15 + $0x8] sm:$0xff]  ;;  %v666_v4 = vld [vmem:[%s608_s15 + $0x10] sm:$0xff]  ;;  %vm668_vm1 = vcmask 261120   ;;  %v3696_v22 = vmov 0.0   ;;  %vm3697_vm2 = vmmov 0   ;;  %s4232_s14 = scalar_lea.vmem %s4197_s6, %s3838_s20 }
  0x4b   : > { %v3437_v5 = vpack.c.bf16 %v665_v3, %v664_v2  ;;  %v667_v6 = vld [vmem:[%s608_s15 + $0x18] sm:$0xff]  ;;  %v3895_v7 = vld [vmem:[#allocation2] sm:$0xff]  ;;  %v751_v10 = vld [vmem:[%s3851_s21 + $0x8] sm:$0xff]  ;;  %3301 = vmatprep.subr.mxu0 %v3696_v22  ;;  %3303 = vmatprep.mubr.msk.f32.mxu0 %vm3697_vm2, %v3696_v22  ;;  %vm912_vm3 = vcmask 64512   ;;  %s3699_s1 = smov 112   ;;  %s3700_s2 = smov 104  }
  0x4c   : > { %v3441_v8 = vpack.c.bf16 %v667_v6, %v666_v4  ;;  %3266 = vmatprep.mubr.msk.f32.mxu1 %vm668_vm1, %v3895_v7  ;;  %v750_v9 = vld [vmem:[%s3851_s21] sm:$0xff]  ;;  %v752_v12 = vld [vmem:[%s3851_s21 + $0x10] sm:$0xff]  ;;  %v753_v13 = vld [vmem:[%s3851_s21 + $0x18] sm:$0xff]  ;;  %p3161_p6 = scmp.ne.s32.totalorder %s3683_s25, 1 }
  0x4d   : > { %3438 = vmatprep.subr.bf16.mxu1 %v3437_v5  ;;  %v3445_v11 = vpack.c.bf16 %v751_v10, %v750_v9  ;;  %v3903_v14 = vld [vmem:[#allocation2 + $0x8] sm:$0xff]  ;;  %v3449_v15 = vpack.c.bf16 %v753_v13, %v752_v12  ;;  %v829_v16 = vld [vmem:[%s3856_s0] sm:$0xff]  ;;  %v831_v19 = vld [vmem:[%s3856_s0 + $0x10] sm:$0xff] }
  0x4e   : > { %3440 = vmatpush3.bf16.msra.mxu1 %v3437_v5  ;;  %v830_v17 = vld [vmem:[%s3856_s0 + $0x8] sm:$0xff]  ;;  %v832_v20 = vld [vmem:[%s3856_s0 + $0x18] sm:$0xff]  ;;  %s3698_s0 = smov 120  }
  0x4f   : > { %3442 = vmatprep.subr.bf16.mxu1 %v3441_v8  ;;  %v3453_v18 = vpack.c.bf16 %v830_v17, %v829_v16  ;;  %v3457_v21 = vpack.c.bf16 %v832_v20, %v831_v19 }
  0x52   : > { %3444 = vmatpush3.bf16.msra.mxu1 %v3441_v8 }
  0x53   : > { %3446 = vmatprep.subr.bf16.mxu1 %v3445_v11 }
  0x55   : > { %3267 = vmatmul.mubr.msk.f32.vlgmr.msra.gmra.mrb[0].mxu1 %vm668_vm1, %v3903_v14 }
  0x56   : > { %3448 = vmatpush3.bf16.msra.mxu1 %v3445_v11  ;;  %3277 = vmatprep.mubr.msk.f32.mxu1 %vm668_vm1, %v3895_v7 }
  0x57   : > { %3450 = vmatprep.subr.bf16.mxu1 %v3449_v15 }
  0x5a   : > { %3452 = vmatpush3.bf16.msra.mxu1 %v3449_v15 }
  0x5b   : > { %3454 = vmatprep.subr.bf16.mxu1 %v3453_v18 }
  0x5d   : > { %3278 = vmatmul.mubr.msk.f32.vlgmr.msra.gmra.mrb[2].mxu1 %vm668_vm1, %v3903_v14 }
  0x5e   : > { %3456 = vmatpush3.bf16.msra.mxu1 %v3453_v18  ;;  %3288 = vmatprep.mubr.msk.f32.mxu1 %vm668_vm1, %v3895_v7 }
  0x5f   : > { %3458 = vmatprep.subr.bf16.mxu1 %v3457_v21 }
  0x62   : > { %3460 = vmatpush3.bf16.msra.mxu1 %v3457_v21 }
  0x63   : > { %3291 = vmatprep.subr.mxu1 %v3696_v22 }
  0x65   : > { %3289 = vmatmul.mubr.msk.f32.vlgmr.msra.gmra.mrb[4].mxu1 %vm668_vm1, %v3903_v14 }
  0x66   : > { %3293 = vmatprep.mubr.msk.f32.mxu1 %vm3697_vm2, %v3696_v22 }
 0x128   : > { %v3925_v23 = vpop.f32.mrb[0].mxu1 }
 0x129   : > { %v3927_v24 = vpop.f32.mrb[1].mxu1 }
 0x130   : > { %v3929_v25 = vpop.f32.mrb[2].mxu1 }
 0x131   : > { %1315 = vrot.lane.b32.xlu1 %v3929_v25, %s3698_s0  ;;  %v3933_v26 = vpop.f32.mrb[3].mxu1 }
 0x132   : > { %3292 = vmatpush3.xpose.msk.msra.mxu1 %vm912_vm3, %v3933_v26 }
 0x133   : > { %3296 = vmatprep.subr.mxu1 %v3696_v22 }
 0x135   : > { %1313 = vrot.lane.b32.xlu1 %v3925_v23, %s3698_s0  ;;  %3294 = vmatmul.mubr.msk.f32.vlgmr.msra.gmra.mrb[6].mxu1 %vm912_vm3, %v3927_v24 }
 0x136   : > { %3297 = vmatpush3.xpose.msk.msra.mxu1 %vm912_vm3, %v3929_v25  ;;  %3298 = vmatprep.mubr.msk.f32.mxu1 %vm3697_vm2, %v3696_v22 }
 0x137   : > { %3306 = vmatprep.subr.mxu1 %v3696_v22 }
 0x138   : > { %v3951_v27 = vpop.f32.mrb[4].mxu1 }
 0x139   : > { %3299 = vmatmul.mubr.msk.f32.vlgmr.msra.gmra.mrb[8].mxu1 %vm912_vm3, %v3925_v23  ;;  %v3953_v28 = vpop.f32.mrb[5].mxu1 }
 0x13a   : > { %3308 = vmatprep.mubr.msk.f32.mxu1 %vm3697_vm2, %v3696_v22  ;;  %3307 = vmatpush3.msra.mxu1 %v3951_v27 }
 0x13b   : > { %3302 = vmatpush3.msra.mxu0 %v3953_v28  ;;  %3316 = vmatprep.subr.mxu1 %v3696_v22 }
 0x13c   : > { %3311 = vmatprep.subr.mxu0 %v3696_v22 }
 0x1a3   : > { %v1316_v47 = vpop.permute.xlu1 %1315 }
 0x1a7   : > { %v1314_v49 = vpop.permute.xlu1 %1313 }
 0x208   : > { %v985_v29 = vpop.f32.mrb[6].mxu1 }
 0x209   : > { %v3295_v30 = vpop.f32.mrb[7].mxu1  ;;  %v1065_v39 = vmul.f32 0.35355338, %v985_v29 }
 0x20b   : > { %v1067_v41 = vsel %vm912_vm3, %v1065_v39, -inf }
 0x20c   : > { %v1061_v31 = vpop.f32.mrb[8].mxu1 }
 0x20d   : > { %v1066_v32 = vmul.f32 0.35355338, %v1061_v31  ;;  %v3300_v33 = vpop.f32.mrb[9].mxu1 }
 0x20f   : > { %v1070_v34 = vsel %vm912_vm3, %v1066_v32, -inf }
 0x210   : > { %1071 = vmax.xlane.f32.xlu0 %v1070_v34 }
 0x29d   : > { %v1072_v35 = vpop.xlane.xlu0 %1071 }
 0x29e   : > { %v1074_v36 = vsub.f32 %v1066_v32, %v1072_v35 }
 0x2a0   : > { %v1077_v37 = vmul.f32 1.442695, %v1074_v36 }
 0x2a2   : > { %3559 = vpow2.f32 %v1077_v37 }
 0x2ac   : > { %v3560_v38 = vpop.eup %3559 }
 0x2ad   : > { %v1082_v40 = vsel %vm912_vm3, %v3560_v38, 0.0 }
 0x2ae   : > { %1083 = vadd.xlane.f32.xlu0 %v1082_v40 }
 0x2b2   : > { %1068 = vmax.xlane.f32.xlu0 %v1067_v41 }
 0x2c8   : > { %1237 = vrot.lane.b32.xlu0 %v3933_v26, %s3698_s0 }
 0x2cc   : > { %1235 = vrot.lane.b32.xlu0 %v3927_v24, %s3698_s0 }
 0x33b   : > { %v1084_v42 = vpop.xlane.xlu0 %1083 }
 0x33c   : > { %3561 = vrcp.f32 %v1084_v42 }
 0x33f   : > { %v1069_v43 = vpop.xlane.xlu0 %1068 }
 0x340   : > { %v1073_v44 = vsub.f32 %v1065_v39, %v1069_v43 }
 0x342   : > { %v1075_v45 = vmul.f32 1.442695, %v1073_v44 }
 0x343   : > { %v1238_v55 = vpop.permute.xlu0 %1237 }
 0x344   : > { %3563 = vpow2.f32 %v1075_v45 }
 0x346   : > { %v3562_v46 = vpop.eup %3561 }
 0x347   : > { %v1088_v48 = vmul.f32 %v3562_v46, %v3560_v38  ;;  %v1236_v57 = vpop.permute.xlu0 %1235  ;;  %v909_v46 = vld [vmem:[%s3861_s13 + $0x8] sm:$0xff] }
 0x349   : > { %3309 = vmatmul.mubr.msk.f32.vlgmr.msra.gmra.mrb[10].mxu1 %vm912_vm3, %v1088_v48 }
 0x34a   : > { %3317 = vmatpush3.xpose.msk.msra.mxu1 %vm912_vm3, %v1316_v47  ;;  %3318 = vmatprep.mubr.msk.f32.mxu1 %vm3697_vm2, %v3696_v22  ;;  %v908_v47 = vld [vmem:[%s3861_s13] sm:$0xff] }
 0x34b   : > { %3326 = vmatprep.subr.mxu1 %v3696_v22 }
 0x34d   : > { %3319 = vmatmul.mubr.msk.f32.vlgmr.msra.gmra.mrb[12].mxu1 %vm912_vm3, %v1314_v49 }
 0x34e   : > { %v3564_v50 = vpop.eup %3563  ;;  %3328 = vmatprep.mubr.msk.f32.mxu1 %vm3697_vm2, %v3696_v22 }
 0x34f   : > { %v1079_v51 = vsel %vm912_vm3, %v3564_v50, 0.0 }
 0x350   : > { %1080 = vadd.xlane.f32.xlu1 %v1079_v51 }
 0x361   : > { %1493 = vrot.lane.b32.xlu1 %v3951_v27, %s3698_s0 }
 0x365   : > { %1733 = vrot.lane.b32.xlu1 %v3933_v26, %s3699_s1 }
 0x369   : > { %1811 = vrot.lane.b32.xlu1 %v3929_v25, %s3699_s1 }
 0x3dd   : > { %v1081_v52 = vpop.xlane.xlu1 %1080 }
 0x3de   : > { %3565 = vrcp.f32 %v1081_v52 }
 0x3e1   : > { %v1494_v53 = vpop.permute.xlu1 %1493 }
 0x3e2   : > { %3327 = vmatpush3.msra.mxu1 %v1494_v53 }
 0x3e3   : > { %3341 = vmatprep.subr.mxu1 %v3696_v22 }
 0x3e5   : > { %v1734_v12 = vpop.permute.xlu1 %1733 }
 0x3e8   : > { %v3566_v54 = vpop.eup %3565 }
 0x3e9   : > { %v1087_v56 = vmul.f32 %v3566_v54, %v3564_v50  ;;  %v1812_v13 = vpop.permute.xlu1 %1811 }
 0x3eb   : > { %3304 = vmatmul.mubr.msk.f32.vlgmr.msra.gmra.mrb[0].mxu0 %vm912_vm3, %v1087_v56 }
 0x3ec   : > { %3312 = vmatpush3.xpose.msk.msra.mxu0 %vm912_vm3, %v1238_v55  ;;  %3313 = vmatprep.mubr.msk.f32.mxu0 %vm3697_vm2, %v3696_v22 }
 0x3ed   : > { %3321 = vmatprep.subr.mxu0 %v3696_v22 }
 0x3ef   : > { %3314 = vmatmul.mubr.msk.f32.vlgmr.msra.gmra.mrb[2].mxu0 %vm912_vm3, %v1236_v57 }
 0x3f0   : > { %3323 = vmatprep.mubr.msk.f32.mxu0 %vm3697_vm2, %v3696_v22 }
 0x41c   : > { %v3990_v58 = vpop.f32.mrb[10].mxu1 }
 0x41d   : > { %v3310_v59 = vpop.f32.mrb[11].mxu1 }
 0x420   : > { %v1387_v60 = vpop.f32.mrb[12].mxu1 }
 0x421   : > { %v1392_v61 = vmul.f32 0.35355338, %v1387_v60  ;;  %v3320_v62 = vpop.f32.mrb[13].mxu1 }
 0x423   : > { %v1396_v63 = vsel %vm912_vm3, %v1392_v61, -inf }
 0x424   : > { %1397 = vmax.xlane.f32.xlu0 %v1396_v63 }
 0x43a   : > { %1731 = vrot.lane.b32.xlu0 %v3927_v24, %s3699_s1 }
 0x4b1   : > { %v1398_v0 = vpop.xlane.xlu0 %1397 }
 0x4b2   : > { %v1400_v1 = vsub.f32 %v1392_v61, %v1398_v0 }
 0x4b4   : > { %v1403_v2 = vmul.f32 1.442695, %v1400_v1 }
 0x4b5   : > { %v1732_v18 = vpop.permute.xlu0 %1731 }
 0x4b6   : > { %3567 = vpow2.f32 %v1403_v2 }
 0x4be   : > { %v3995_v3 = vpop.f32.mrb[0].mxu0 }
 0x4bf   : > { %v3305_v4 = vpop.f32.mrb[1].mxu0 }
 0x4c0   : > { %v3568_v5 = vpop.eup %3567 }
 0x4c1   : > { %v1408_v6 = vsel %vm912_vm3, %v3568_v5, 0.0 }
 0x4c2   : > { %v1309_v8 = vpop.f32.mrb[2].mxu0  ;;  %1409 = vadd.xlane.f32.xlu1 %v1408_v6 }
 0x4c3   : > { %v3315_v9 = vpop.f32.mrb[3].mxu0  ;;  %v1391_v10 = vmul.f32 0.35355338, %v1309_v8 }
 0x4c5   : > { %v1393_v11 = vsel %vm912_vm3, %v1391_v10, -inf }
 0x4d3   : > { %1809 = vrot.lane.b32.xlu1 %v3925_v23, %s3699_s1 }
 0x4f7   : > { %1394 = vmax.xlane.f32.xlu1 %v1393_v11 }
 0x508   : > { %1416 = vrot.lane.b32.xlu1 %v3953_v28, %s3698_s0 }
 0x54f   : > { %v1410_v15 = vpop.xlane.xlu1 %1409 }
 0x550   : > { %3569 = vrcp.f32 %v1410_v15 }
 0x553   : > { %v1810_v19 = vpop.permute.xlu1 %1809 }
 0x55a   : > { %v3570_v16 = vpop.eup %3569 }
 0x55b   : > { %v1414_v17 = vmul.f32 %v3570_v16, %v3568_v5 }
 0x55d   : > { %3329 = vmatmul.mubr.msk.f32.vlgmr.msra.gmra.mrb[14].mxu1 %vm912_vm3, %v1414_v17 }
 0x55e   : > { %3342 = vmatpush3.xpose.msk.msra.mxu1 %vm912_vm3, %v1734_v12  ;;  %3343 = vmatprep.mubr.msk.f32.mxu1 %vm3697_vm2, %v3696_v22 }
 0x55f   : > { %3346 = vmatprep.subr.mxu1 %v3696_v22 }
 0x561   : > { %3344 = vmatmul.mubr.msk.f32.vlgmr.msra.gmra.mrb[16].mxu1 %vm912_vm3, %v1732_v18 }
 0x562   : > { %3347 = vmatpush3.xpose.msk.msra.mxu1 %vm912_vm3, %v1812_v13  ;;  %3348 = vmatprep.mubr.msk.f32.mxu1 %vm3697_vm2, %v3696_v22 }
 0x563   : > { %3356 = vmatprep.subr.mxu1 %v3696_v22 }
 0x565   : > { %3349 = vmatmul.mubr.msk.f32.vlgmr.msra.gmra.mrb[18].mxu1 %vm912_vm3, %v1810_v19 }
 0x566   : > { %3358 = vmatprep.mubr.msk.f32.mxu1 %vm3697_vm2, %v3696_v22 }
 0x584   : > { %v1395_v20 = vpop.xlane.xlu1 %1394 }
 0x585   : > { %v1399_v21 = vsub.f32 %v1391_v10, %v1395_v20 }
 0x587   : > { %v1401_v29 = vmul.f32 1.442695, %v1399_v21 }
 0x588   : > { %v1417_v30 = vpop.permute.xlu1 %1416 }
 0x589   : > { %3571 = vpow2.f32 %v1401_v29  ;;  %3322 = vmatpush3.msra.mxu0 %v1417_v30 }
 0x58a   : > { %3331 = vmatprep.subr.mxu0 %v909_v46 }
 0x593   : > { %v3572_v31 = vpop.eup %3571 }
 0x594   : > { %v1405_v32 = vsel %vm912_vm3, %v3572_v31, 0.0 }
 0x595   : > { %1406 = vadd.xlane.f32.xlu0 %v1405_v32 }
 0x622   : > { %v1407_v33 = vpop.xlane.xlu0 %1406 }
 0x623   : > { %3573 = vrcp.f32 %v1407_v33 }
 0x62d   : > { %v3574_v34 = vpop.eup %3573 }
 0x62e   : > { %v1413_v35 = vmul.f32 %v3574_v34, %v3572_v31 }
 0x630   : > { %3324 = vmatmul.mubr.msk.f32.vlgmr.msra.gmra.mrb[4].mxu0 %vm912_vm3, %v1413_v35  ;;  %v1565_v36 = vpop.f32.mrb[14].mxu1 }
 0x631   : > { %v3330_v37 = vpop.f32.mrb[15].mxu1  ;;  %3332 = vmatpush3.msra.mxu0 %v909_v46 }
 0x632   : > { %3336 = vmatprep.subr.mxu0 %v908_v47 }
 0x634   : > { %v1805_v38 = vpop.f32.mrb[16].mxu1 }
 0x635   : > { %v1887_v39 = vmul.f32 0.35355338, %v1805_v38  ;;  %v3345_v40 = vpop.f32.mrb[17].mxu1 }
 0x637   : > { %v1889_v41 = vsel %vm912_vm3, %v1887_v39, -inf }
 0x638   : > { %1890 = vmax.xlane.f32.xlu0 %v1889_v41  ;;  %v1883_v42 = vpop.f32.mrb[18].mxu1 }
 0x639   : > { %v1888_v43 = vmul.f32 0.35355338, %v1883_v42  ;;  %v3350_v44 = vpop.f32.mrb[19].mxu1  ;;  %v911_v42 = vld [vmem:[%s3861_s13 + $0x18] sm:$0xff] }
 0x63b   : > { %v1892_v45 = vsel %vm912_vm3, %v1888_v43, -inf }
 0x63c   : > { %1893 = vmax.xlane.f32.xlu0 %v1892_v45 }
 0x6c5   : > { %v1891_v48 = vpop.xlane.xlu0 %1890 }
 0x6c6   : > { %v1895_v49 = vsub.f32 %v1887_v39, %v1891_v48 }
 0x6c8   : > { %v1897_v50 = vmul.f32 1.442695, %v1895_v49 }
 0x6c9   : > { %v1894_v51 = vpop.xlane.xlu0 %1893 }
 0x6ca   : > { %3575 = vpow2.f32 %v1897_v50  ;;  %v1896_v52 = vsub.f32 %v1888_v43, %v1894_v51 }
 0x6cc   : > { %v1899_v53 = vmul.f32 1.442695, %v1896_v52 }
 0x6ce   : > { %3577 = vpow2.f32 %v1899_v53 }
 0x6d4   : > { %v3576_v54 = vpop.eup %3575 }
 0x6d5   : > { %v1901_v55 = vsel %vm912_vm3, %v3576_v54, 0.0 }
 0x6d6   : > { %1902 = vadd.xlane.f32.xlu0 %v1901_v55 }
 0x6d8   : > { %v3578_v56 = vpop.eup %3577 }
 0x6d9   : > { %v1904_v57 = vsel %vm912_vm3, %v3578_v56, 0.0 }
 0x6da   : > { %1905 = vadd.xlane.f32.xlu1 %v1904_v57 }
 0x6eb   : > { %2146 = vrot.lane.b32.xlu1 %v3927_v24, %s3700_s2 }
 0x6ec   : > { %1911 = vrot.lane.b32.xlu0 %v3953_v28, %s3699_s1 }
 0x6f0   : > { %1987 = vrot.lane.b32.xlu0 %v3951_v27, %s3699_s1 }
 0x6f4   : > { %2148 = vrot.lane.b32.xlu0 %v3933_v26, %s3700_s2 }
 0x6f8   : > { %2226 = vrot.lane.b32.xlu0 %v3929_v25, %s3700_s2 }
 0x6fc   : > { %2224 = vrot.lane.b32.xlu0 %v3925_v23, %s3700_s2  ;;  %v910_v23 = vld [vmem:[%s3861_s13 + $0x10] sm:$0xff]  ;;  %s4231_s13 = scalar_lea.vmem %s4196_s5, %s3838_s20 }
 0x703   : > { %v1488_v59 = vpop.f32.mrb[4].mxu0 }
 0x704   : > { %v3325_v60 = vpop.f32.mrb[5].mxu0  ;;  %3333 = vmatprep.mubr.msk.f32.mxu0 %vm912_vm3, %v1488_v59 }
 0x705   : > { %3334 = vmatmul.mubr.msk.f32.vlgmr.msra.gmra.mrb[6].mxu0 %vm912_vm3, %v1565_v36 }
 0x706   : > { %3338 = vmatprep.mubr.msk.f32.mxu0 %vm912_vm3, %v3995_v3  ;;  %3337 = vmatpush3.msra.mxu0 %v908_v47 }
 0x707   : > { %3351 = vmatprep.subr.mxu0 %v3696_v22 }
 0x70d   : > { %3339 = vmatmul.mubr.msk.f32.vlgmr.msra.gmra.mrb[6].mxu0 %vm912_vm3, %v3990_v58 }
 0x70e   : > { %3353 = vmatprep.mubr.msk.f32.mxu0 %vm3697_vm2, %v3696_v22 }
 0x763   : > { %v1903_v24 = vpop.xlane.xlu0 %1902 }
 0x764   : > { %3579 = vrcp.f32 %v1903_v24  ;;  %v2608_v24 = vld [vmem:[%s3870_s18] sm:$0xff] }
 0x767   : > { %v1906_v25 = vpop.xlane.xlu1 %1905  ;;  %v1912_v26 = vpop.permute.xlu0 %1911 }
 0x768   : > { %3581 = vrcp.f32 %v1906_v25  ;;  %3352 = vmatpush3.msra.mxu0 %v1912_v26  ;;  %v2610_v26 = vld [vmem:[%s3870_s18 + $0x10] sm:$0xff] }
 0x769   : > { %3361 = vmatprep.subr.mxu0 %v910_v23 }
 0x76b   : > { %v1988_v61 = vpop.permute.xlu0 %1987  ;;  %v2147_v2 = vpop.permute.xlu1 %2146 }
 0x76c   : > { %3357 = vmatpush3.msra.mxu1 %v1988_v61  ;;  %v2611_v61 = vld [vmem:[%s3870_s18 + $0x18] sm:$0xff] }
 0x76d   : > { %3366 = vmatprep.subr.mxu1 %v3696_v22 }
 0x76e   : > { %v3580_v62 = vpop.eup %3579 }
 0x76f   : > { %v1909_v63 = vmul.f32 %v3580_v62, %v3576_v54  ;;  %v2149_v1 = vpop.permute.xlu0 %2148  ;;  %v3465_v62 = vpack.c.bf16 %v2611_v61, %v2610_v26 }
 0x771   : > { %3354 = vmatmul.mubr.msk.f32.vlgmr.msra.gmra.mrb[8].mxu0 %vm912_vm3, %v1909_v63 }
 0x772   : > { %v3582_v58 = vpop.eup %3581  ;;  %3362 = vmatpush3.msra.mxu0 %v910_v23  ;;  %v2609_v23 = vld [vmem:[%s3870_s18 + $0x8] sm:$0xff] }
 0x773   : > { %v1910_v0 = vmul.f32 %v3582_v58, %v3578_v56  ;;  %3371 = vmatprep.subr.mxu0 %v3696_v22  ;;  %v2227_v5 = vpop.permute.xlu0 %2226  ;;  %v3461_v25 = vpack.c.bf16 %v2609_v23, %v2608_v24 }
 0x775   : > { %3359 = vmatmul.mubr.msk.f32.vlgmr.msra.gmra.mrb[20].mxu1 %vm912_vm3, %v1910_v0 }
 0x776   : > { %3367 = vmatpush3.xpose.msk.msra.mxu1 %vm912_vm3, %v2149_v1  ;;  %3368 = vmatprep.mubr.msk.f32.mxu1 %vm3697_vm2, %v3696_v22 }
 0x777   : > { %3376 = vmatprep.subr.mxu1 %v3696_v22  ;;  %v2225_v9 = vpop.permute.xlu0 %2224 }
 0x779   : > { %3369 = vmatmul.mubr.msk.f32.vlgmr.msra.gmra.mrb[22].mxu1 %vm912_vm3, %v2147_v2 }
 0x77a   : > { %3378 = vmatprep.mubr.msk.f32.mxu1 %vm3697_vm2, %v3696_v22 }
 0x844   : > { %v1983_v3 = vpop.f32.mrb[8].mxu0 }
 0x845   : > { %v3355_v4 = vpop.f32.mrb[9].mxu0  ;;  %3363 = vmatprep.mubr.msk.f32.mxu0 %vm912_vm3, %v1983_v3 }
 0x848   : > { %v2059_v6 = vpop.f32.mrb[20].mxu1 }
 0x849   : > { %v3360_v8 = vpop.f32.mrb[21].mxu1  ;;  %3364 = vmatmul.mubr.msk.f32.vlgmr.msra.gmra.mrb[6].mxu0 %vm912_vm3, %v2059_v6 }
 0x84a   : > { %3372 = vmatpush3.xpose.msk.msra.mxu0 %vm912_vm3, %v2227_v5  ;;  %3373 = vmatprep.mubr.msk.f32.mxu0 %vm3697_vm2, %v3696_v22  ;;  %v3153_v5 = vld [vmem:[%s4231_s13] ss:$0 sm:$0xff] }
 0x84b   : > { %3381 = vmatprep.subr.mxu0 %v3696_v22  ;;  %v3154_v8 = vld [vmem:[%s4232_s14] ss:$0 sm:$0xff] }
 0x84c   : > { %v2220_v10 = vpop.f32.mrb[22].mxu1 }
 0x84d   : > { %v2302_v11 = vmul.f32 0.35355338, %v2220_v10  ;;  %v3370_v12 = vpop.f32.mrb[23].mxu1  ;;  %3374 = vmatmul.mubr.msk.f32.vlgmr.msra.gmra.mrb[10].mxu0 %vm912_vm3, %v2225_v9 }
 0x84e   : > { %3383 = vmatprep.mubr.msk.f32.mxu0 %vm3697_vm2, %v3696_v22 }
 0x84f   : > { %v2304_v13 = vsel %vm912_vm3, %v2302_v11, -inf }
 0x850   : > { %2305 = vmax.xlane.f32.xlu0 %v2304_v13 }
 0x8dd   : > { %v2306_v15 = vpop.xlane.xlu0 %2305 }
 0x8de   : > { %v2310_v16 = vsub.f32 %v2302_v11, %v2306_v15 }
 0x8e0   : > { %v2312_v17 = vmul.f32 1.442695, %v2310_v16  ;;  %v2754_v16 = vld [vmem:[%s3880_s26] sm:$0xff] }
 0x8e2   : > { %3583 = vpow2.f32 %v2312_v17  ;;  %v2755_v17 = vld [vmem:[%s3880_s26 + $0x8] sm:$0xff] }
 0x8ec   : > { %v3584_v18 = vpop.eup %3583 }
 0x8ed   : > { %v2316_v19 = vsel %vm912_vm3, %v3584_v18, 0.0 }
 0x8ee   : > { %2317 = vadd.xlane.f32.xlu0 %v2316_v19  ;;  %v2756_v19 = vld [vmem:[%s3880_s26 + $0x10] sm:$0xff] }
 0x920   : > { %v2298_v20 = vpop.f32.mrb[10].mxu0 }
 0x921   : > { %v2303_v21 = vmul.f32 0.35355338, %v2298_v20  ;;  %v3375_v29 = vpop.f32.mrb[11].mxu0  ;;  %v2757_v20 = vld [vmem:[%s3880_s26 + $0x18] sm:$0xff] }
 0x922   : > { %v2758_v29 = vld [vmem:[%s3880_s26 + $0x20] sm:$0xff] }
 0x923   : > { %v2307_v30 = vsel %vm912_vm3, %v2303_v21, -inf }
 0x924   : > { %2308 = vmax.xlane.f32.xlu1 %v2307_v30  ;;  %v2759_v30 = vld [vmem:[%s3880_s26 + $0x28] sm:$0xff] }
 0x935   : > { %2402 = vrot.lane.b32.xlu1 %v3951_v27, %s3700_s2 }
 0x97b   : > { %v2318_v36 = vpop.xlane.xlu0 %2317 }
 0x9b1   : > { %v2309_v22 = vpop.xlane.xlu1 %2308 }
 0x9b2   : > { %v2311_v31 = vsub.f32 %v2303_v21, %v2309_v22  ;;  %v3473_v21 = vpack.c.bf16 %v2757_v20, %v2756_v19  ;;  %v3477_v22 = vpack.c.bf16 %v2759_v30, %v2758_v29  ;;  %v3701_v29 = vmov 1.0  }
 0x9b4   : > { %v2314_v32 = vmul.f32 1.442695, %v2311_v31  ;;  %v2760_v31 = vld [vmem:[%s3880_s26 + $0x30] sm:$0xff] }
 0x9b5   : > { %v2403_v33 = vpop.permute.xlu1 %2402 }
 0x9b6   : > { %3585 = vpow2.f32 %v2314_v32  ;;  %3382 = vmatpush3.msra.mxu0 %v2403_v33  ;;  %v2761_v32 = vld [vmem:[%s3880_s26 + $0x38] sm:$0xff] }
 0x9b7   : > { %3587 = vrcp.f32 %v2318_v36  ;;  %3386 = vmatprep.subr.mxu0 %v911_v42  ;;  %v3481_v33 = vpack.c.bf16 %v2761_v32, %v2760_v31 }
 0x9c0   : > { %v3586_v34 = vpop.eup %3585 }
 0x9c1   : > { %v2319_v35 = vsel %vm912_vm3, %v3586_v34, 0.0  ;;  %v3588_v38 = vpop.eup %3587 }
 0x9c2   : > { %2320 = vadd.xlane.f32.xlu0 %v2319_v35  ;;  %v2324_v27 = vmul.f32 %v3588_v38, %v3584_v18  ;;  %v3469_v18 = vpack.c.bf16 %v2755_v17, %v2754_v16  ;;  %v2763_v35 = vld [vmem:[%s3880_s26 + $0x48] sm:$0xff]  ;;  %v2765_v38 = vld [vmem:[%s3880_s26 + $0x58] sm:$0xff] }
 0x9d8   : > { %2326 = vrot.lane.b32.xlu0 %v3953_v28, %s3700_s2 }
 0xa4f   : > { %v2321_v37 = vpop.xlane.xlu0 %2320 }
 0xa50   : > { %3589 = vrcp.f32 %v2321_v37  ;;  %v2764_v37 = vld [vmem:[%s3880_s26 + $0x50] sm:$0xff] }
 0xa53   : > { %v2327_v39 = vpop.permute.xlu0 %2326 }
 0xa54   : > { %3377 = vmatpush3.msra.mxu1 %v2327_v39  ;;  %v2766_v39 = vld [vmem:[%s3880_s26 + $0x60] sm:$0xff] }
 0xa55   : > { %3379 = vmatmul.mubr.msk.f32.vlgmr.msra.gmra.mrb[24].mxu1 %vm912_vm3, %v2324_v27  ;;  %3462 = vmatprep.subr.bf16.mxu1 %v3461_v25  ;;  %v3489_v27 = vpack.c.bf16 %v2765_v38, %v2764_v37 }
 0xa56   : > { %3464 = vmatpush3.bf16.msra.mxu1 %v3461_v25 }
 0xa57   : > { %3466 = vmatprep.subr.bf16.mxu1 %v3465_v62 }
 0xa5a   : > { %v3590_v40 = vpop.eup %3589  ;;  %3468 = vmatpush3.bf16.msra.mxu1 %v3465_v62 }
 0xa5b   : > { %v2325_v41 = vmul.f32 %v3590_v40, %v3586_v34  ;;  %v2762_v34 = vld [vmem:[%s3880_s26 + $0x40] sm:$0xff]  ;;  %v2767_v40 = vld [vmem:[%s3880_s26 + $0x68] sm:$0xff] }
 0xa5c   : > { %v3485_v36 = vpack.c.bf16 %v2763_v35, %v2762_v34 }
 0xa5d   : > { %3384 = vmatmul.mubr.msk.f32.vlgmr.msra.gmra.mrb[12].mxu0 %vm912_vm3, %v2325_v41  ;;  %v3493_v41 = vpack.c.bf16 %v2767_v40, %v2766_v39  ;;  %v3158_v39 = vld [vmem:[%s645_s16] ss:$0 sm:$0xff] }
 0xa5e   : > { %3387 = vmatpush3.msra.mxu0 %v911_v42  ;;  %v2768_v42 = vld [vmem:[%s3880_s26 + $0x70] sm:$0xff] }
 0xa5f   : > { %3470 = vmatprep.subr.bf16.mxu0 %v3469_v18 }
 0xb28   : > { %v2398_v43 = vpop.f32.mrb[24].mxu1 }
 0xb29   : > { %v3380_v44 = vpop.f32.mrb[25].mxu1  ;;  %3388 = vmatprep.mubr.msk.f32.mxu0 %vm912_vm3, %v2398_v43  ;;  %v2769_v43 = vld [vmem:[%s3880_s26 + $0x78] sm:$0xff] }
 0xb2a   : > { %v3497_v44 = vpack.c.bf16 %v2769_v43, %v2768_v42 }
 0xb30   : > { %v2474_v28 = vpop.f32.mrb[12].mxu0 }
 0xb31   : > { %v3385_v45 = vpop.f32.mrb[13].mxu0  ;;  %3389 = vmatmul.mubr.msk.f32.vlgmr.msra.gmra.mrb[6].mxu0 %vm912_vm3, %v2474_v28  ;;  %v3155_v28 = vld [vmem:[%s637_s28] ss:$0 sm:$0xff] }
 0xb32   : > { %3472 = vmatpush3.bf16.msra.mxu0 %v3469_v18 }
 0xb33   : > { %3474 = vmatprep.subr.bf16.mxu0 %v3473_v21 }
 0xb36   : > { %3476 = vmatpush3.bf16.msra.mxu0 %v3473_v21 }
 0xb37   : > { %3478 = vmatprep.subr.bf16.mxu0 %v3477_v22 }
 0xb3a   : > { %3480 = vmatpush3.bf16.msra.mxu0 %v3477_v22 }
 0xb3b   : > { %3482 = vmatprep.subr.bf16.mxu0 %v3481_v33 }
 0xb3e   : > { %3484 = vmatpush3.bf16.msra.mxu0 %v3481_v33 }
 0xb3f   : > { %3486 = vmatprep.subr.bf16.mxu0 %v3485_v36 }
 0xb42   : > { %3488 = vmatpush3.bf16.msra.mxu0 %v3485_v36 }
 0xb43   : > { %3490 = vmatprep.subr.bf16.mxu0 %v3489_v27 }
 0xb46   : > { %3492 = vmatpush3.bf16.msra.mxu0 %v3489_v27 }
 0xb47   : > { %3494 = vmatprep.subr.bf16.mxu0 %v3493_v41 }
 0xb4a   : > { %3496 = vmatpush3.bf16.msra.mxu0 %v3493_v41 }
 0xb4b   : > { %3498 = vmatprep.subr.bf16.mxu0 %v3497_v44 }
 0xb4e   : > { %3500 = vmatpush3.bf16.msra.mxu0 %v3497_v44 }
 0xc04   : > { %v3390_v46 = vpop.f32.mrb[6].mxu0 }
 0xc05   : > { %v2562_v47 = vadd.f32 %v3390_v46, %v3903_v14  ;;  %v2550_v48 = vpop.f32.mrb[7].mxu0 }
 0xc06   : > { %v2561_v49 = vadd.f32 %v2550_v48, %v3895_v7 }
 0xc07   : > { %v2568_v50 = vsel %vm668_vm1, %v2562_v47, 0.0 }
 0xc08   : > { %2569 = vadd.xlane.f32.xlu1 %v2568_v50  ;;  %v2565_v51 = vsel %vm668_vm1, %v2561_v49, 0.0 }
 0xc09   : > { %2566 = vadd.xlane.f32.xlu0 %v2565_v51 }
 0xc95   : > { %v2570_v52 = vpop.xlane.xlu1 %2569 }
 0xc96   : > { %v2573_v53 = vmul.f32 0.03125, %v2570_v52  ;;  %v2567_v54 = vpop.xlane.xlu0 %2566 }
 0xc97   : > { %v2572_v55 = vmul.f32 0.03125, %v2567_v54 }
 0xc98   : > { %v2575_v56 = vsub.f32 %v2562_v47, %v2573_v53 }
 0xc99   : > { %v2574_v57 = vsub.f32 %v2561_v49, %v2572_v55 }
 0xc9a   : > { %v2577_v7 = vmul.f32 %v2575_v56, %v2575_v56 }
 0xc9b   : > { %v2576_v14 = vmul.f32 %v2574_v57, %v2574_v57 }
 0xc9c   : > { %v2581_v60 = vsel %vm668_vm1, %v2577_v7, 0.0 }
 0xc9d   : > { %v2578_v59 = vsel %vm668_vm1, %v2576_v14, 0.0 }
 0xc9e   : > { %2579 = vadd.xlane.f32.xlu0 %v2578_v59 }
 0xca2   : > { %2582 = vadd.xlane.f32.xlu0 %v2581_v60 }
 0xd2b   : > { %v2580_v63 = vpop.xlane.xlu0 %2579 }
 0xd2c   : > { %v2584_v58 = vmul.f32 0.03125, %v2580_v63 }
 0xd2e   : > { %v2586_v0 = vadd.f32 1e-05, %v2584_v58 }
 0xd2f   : > { %v2583_v1 = vpop.xlane.xlu0 %2582 }
 0xd30   : > { %3591 = vrsqrt.f32 %v2586_v0  ;;  %v2585_v2 = vmul.f32 0.03125, %v2583_v1 }
 0xd32   : > { %v2587_v3 = vadd.f32 1e-05, %v2585_v2 }
 0xd34   : > { %3593 = vrsqrt.f32 %v2587_v3 }
 0xd3a   : > { %v3592_v4 = vpop.eup %3591 }
 0xd3b   : > { %v2590_v6 = vmul.f32 %v3592_v4, %v2574_v57 }
 0xd3d   : > { %v2598_v9 = vmul.f32 %v3153_v5, %v2590_v6 }
 0xd3e   : > { %v3594_v10 = vpop.eup %3593 }
 0xd3f   : > { %v2591_v11 = vmul.f32 %v3594_v10, %v2575_v56  ;;  %v4099_v12 = vadd.f32 %v3154_v8, %v2598_v9 }
 0xd41   : > { %v2599_v13 = vmul.f32 %v3153_v5, %v2591_v11  ;;  %3399 = vmatprep.mubr.msk.f32.mxu1 %vm668_vm1, %v4099_v12 }
 0xd43   : > { %v4103_v15 = vadd.f32 %v3154_v8, %v2599_v13 }
 0xd45   : > { %3400 = vmatmul.mubr.msk.f32.vlgmr.msra.gmra.mrb[26].mxu1 %vm668_vm1, %v4103_v15 }
 0xe18   : > { %v3401_v45 = vpop.f32.mrb[26].mxu1 }
 0xe19   : > { %v2697_v46 = vadd.f32 %v3401_v45, %v3155_v28  ;;  %v2691_v47 = vpop.f32.mrb[27].mxu1 }
 0xe1a   : > { %v2692_v48 = vadd.f32 %v3155_v28, %v2691_v47 }
 0xe1b   : > { %v2703_v49 = vmul.f32 0.70710677, %v2697_v46  ;;  %v2701_v37 = vmul.f32 0.5, %v2697_v46 }
 0xe1c   : > { %v2702_v50 = vmul.f32 0.70710677, %v2692_v48  ;;  %v2700_v35 = vmul.f32 0.5, %v2692_v48 }
 0xe1d   : > { %v2709_v51 = vand.u32 2147483647, %v2703_v49  ;;  %vm2705_vm4 = vcmp.lt.f32.partialorder %v2703_v49, 0.0 }
 0xe1e   : > { %v2708_v52 = vand.u32 2147483647, %v2702_v50  ;;  %vm2704_vm5 = vcmp.lt.f32.partialorder %v2702_v50, 0.0  ;;  %v2707_v30 = vsel %vm2705_vm4, -1.0, %v3701_v29 }
 0xe1f   : > { %v2711_v53 = vmul.f32 0.3275911, %v2709_v51  ;;  %v2737_v57 = vsub.f32 0.0, %v2709_v51  ;;  %v2706_v32 = vsel %vm2704_vm5, -1.0, %v3701_v29 }
 0xe20   : > { %v2710_v54 = vmul.f32 0.3275911, %v2708_v52  ;;  %v2736_v14 = vsub.f32 0.0, %v2708_v52 }
 0xe21   : > { %v2713_v55 = vadd.f32 1.0, %v2711_v53  ;;  %v2739_v7 = vmul.f32 %v2737_v57, %v2709_v51 }
 0xe22   : > { %v2712_v56 = vadd.f32 1.0, %v2710_v54  ;;  %v2738_v23 = vmul.f32 %v2736_v14, %v2708_v52 }
 0xe23   : > { %3595 = vrcp.f32 %v2713_v55  ;;  %v2742_v61 = vmul.f32 1.442695, %v2739_v7 }
 0xe24   : > { %3597 = vrcp.f32 %v2712_v56  ;;  %v2740_v58 = vmul.f32 1.442695, %v2738_v23 }
 0xe25   : > { %3599 = vpow2.f32 %v2742_v61 }
 0xe26   : > { %3601 = vpow2.f32 %v2740_v58 }
 0xe2d   : > { %v3596_v59 = vpop.eup %3595 }
 0xe2e   : > { %v3598_v60 = vpop.eup %3597  ;;  %v2719_v24 = vmul.f32 1.0614054, %v3596_v59 }
 0xe2f   : > { %v2718_v25 = vmul.f32 1.0614054, %v3598_v60  ;;  %v3600_v16 = vpop.eup %3599 }
 0xe30   : > { %v2721_v26 = vadd.f32 -1.4531521, %v2719_v24  ;;  %v3602_v18 = vpop.eup %3601  ;;  %v3159_v24 = vld [vmem:[%s648_s23] ss:$0 sm:$0xff] }
 0xe31   : > { %v2720_v62 = vadd.f32 -1.4531521, %v2718_v25 }
 0xe32   : > { %v2723_v63 = vmul.f32 %v3596_v59, %v2721_v26  ;;  %v3160_v26 = vld [vmem:[%s651_s7] ss:$0 sm:$0xff] }
 0xe33   : > { %v2722_v0 = vmul.f32 %v3598_v60, %v2720_v62 }
 0xe34   : > { %v2725_v1 = vadd.f32 1.4214138, %v2723_v63 }
 0xe35   : > { %v2724_v2 = vadd.f32 1.4214138, %v2722_v0 }
 0xe36   : > { %v2727_v3 = vmul.f32 %v3596_v59, %v2725_v1 }
 0xe37   : > { %v2726_v4 = vmul.f32 %v3598_v60, %v2724_v2 }
 0xe38   : > { %v2729_v5 = vadd.f32 -0.28449672, %v2727_v3 }
 0xe39   : > { %v2728_v6 = vadd.f32 -0.28449672, %v2726_v4 }
 0xe3a   : > { %v2731_v8 = vmul.f32 %v3596_v59, %v2729_v5 }
 0xe3b   : > { %v2730_v9 = vmul.f32 %v3598_v60, %v2728_v6 }
 0xe3c   : > { %v2733_v10 = vadd.f32 0.2548296, %v2731_v8 }
 0xe3d   : > { %v2732_v11 = vadd.f32 0.2548296, %v2730_v9 }
 0xe3e   : > { %v2735_v13 = vmul.f32 %v3596_v59, %v2733_v10 }
 0xe3f   : > { %v2734_v17 = vmul.f32 %v3598_v60, %v2732_v11 }
 0xe40   : > { %v2745_v19 = vmul.f32 %v3600_v16, %v2735_v13 }
 0xe41   : > { %v2744_v20 = vmul.f32 %v3602_v18, %v2734_v17 }
 0xe42   : > { %v2747_v21 = vsub.f32 1.0, %v2745_v19 }
 0xe43   : > { %v2746_v22 = vsub.f32 1.0, %v2744_v20 }
 0xe44   : > { %v2749_v31 = vmul.f32 %v2747_v21, %v2707_v30 }
 0xe45   : > { %v2748_v33 = vmul.f32 %v2746_v22, %v2706_v32 }
 0xe46   : > { %v2751_v34 = vadd.f32 1.0, %v2749_v31 }
 0xe47   : > { %v2750_v36 = vadd.f32 1.0, %v2748_v33 }
 0xe48   : > { %v2753_v27 = vmul.f32 %v2751_v34, %v2701_v37 }
 0xe49   : > { %v2752_v38 = vmul.f32 %v2750_v36, %v2700_v35 }
 0xe4b   : > { %3434 = vmatprep.mubr.f32.mxu0 %v2752_v38 }
 0xe4c   : > { %3435 = vmatmul.mubr.f32.vlgmr.msra.gmra.mrb[14].mxu0 %v2753_v27 }
 0xf1f   : > { %v3436_v40 = vpop.f32.mrb[14].mxu0 }
 0xf20   : > { %v2849_v41 = vadd.f32 %v3436_v40, %v3158_v39  ;;  %v2843_v42 = vpop.f32.mrb[15].mxu0 }
 0xf21   : > { %v2844_v43 = vadd.f32 %v3158_v39, %v2843_v42 }
 0xf22   : > { %v2853_v44 = vadd.f32 %v2849_v41, %v4103_v15 }
 0xf23   : > { %v2852_v28 = vadd.f32 %v2844_v43, %v4099_v12 }
 0xf24   : > { %v2859_v45 = vsel %vm668_vm1, %v2853_v44, 0.0 }
 0xf25   : > { %2860 = vadd.xlane.f32.xlu1 %v2859_v45  ;;  %v2856_v46 = vsel %vm668_vm1, %v2852_v28, 0.0 }
 0xf26   : > { %2857 = vadd.xlane.f32.xlu0 %v2856_v46 }
 0xfb2   : > { %v2861_v47 = vpop.xlane.xlu1 %2860 }
 0xfb3   : > { %v2863_v48 = vmul.f32 0.03125, %v2861_v47  ;;  %v2858_v49 = vpop.xlane.xlu0 %2857 }
 0xfb4   : > { %v2862_v50 = vmul.f32 0.03125, %v2858_v49 }
 0xfb5   : > { %v2865_v51 = vsub.f32 %v2853_v44, %v2863_v48 }
 0xfb6   : > { %v2864_v52 = vsub.f32 %v2852_v28, %v2862_v50 }
 0xfb7   : > { %v2867_v53 = vmul.f32 %v2865_v51, %v2865_v51 }
 0xfb8   : > { %v2866_v54 = vmul.f32 %v2864_v52, %v2864_v52 }
 0xfb9   : > { %v2871_v55 = vsel %vm668_vm1, %v2867_v53, 0.0 }
 0xfba   : > { %2872 = vadd.xlane.f32.xlu1 %v2871_v55  ;;  %v2868_v12 = vsel %vm668_vm1, %v2866_v54, 0.0 }
 0xfbb   : > { %2869 = vadd.xlane.f32.xlu0 %v2868_v12 }
0x1047   : > { %v2873_v15 = vpop.xlane.xlu1 %2872 }
0x1048   : > { %v2875_v56 = vmul.f32 0.03125, %v2873_v15  ;;  %v2870_v57 = vpop.xlane.xlu0 %2869 }
0x1049   : > { %v2874_v14 = vmul.f32 0.03125, %v2870_v57 }
0x104a   : > { %v2877_v59 = vadd.f32 1e-05, %v2875_v56 }
0x104b   : > { %v2876_v7 = vadd.f32 1e-05, %v2874_v14 }
0x104c   : > { %3603 = vrsqrt.f32 %v2877_v59 }
0x104d   : > { %3605 = vrsqrt.f32 %v2876_v7 }
0x1056   : > { %v3604_v60 = vpop.eup %3603 }
0x1057   : > { %v3606_v23 = vpop.eup %3605  ;;  %v2881_v25 = vmul.f32 %v3604_v60, %v2865_v51 }
0x1058   : > { %v2880_v61 = vmul.f32 %v3606_v23, %v2864_v52  ;;  %2903 = sbr.rel (%p3161_p6) target bundleno = 4191 (0x105f), region = 84 }
0x1059   : > { %v2889_v62 = vmul.f32 %v3159_v24, %v2881_v25 }
0x105a   : > { %v2888_v63 = vmul.f32 %v3159_v24, %v2880_v61 }
0x105b   : > { %v2897_v58 = vadd.f32 %v3160_v26, %v2889_v62 }
0x105c   : > { %v2896_v0 = vadd.f32 %v3160_v26, %v2888_v63 }
0x105d   : > { %2899 = vst.msk [vmem:[#allocation2 + $0x8] sm:$0xff] %vm668_vm1, %v2897_v58  ;;  %2905 = vst.msk [vmem:[#allocation6 + $0x8] sm:$0xff] (!%p3161_p6), %vm668_vm1, %v2897_v58 }
0x105e   : > { %2898 = vst.msk [vmem:[#allocation2] sm:$0xff] %vm668_vm1, %v2896_v0  ;;  %2904 = vst.msk [vmem:[#allocation6] sm:$0xff] (!%p3161_p6), %vm668_vm1, %v2896_v0 }
0x105f PF: > { %s4233_s20 = sadd.s32 4294967295, %s3691_s27   ;;  %s3702_s23 = smov [#allocation6]  }
0x1060   : > { %p4156_p8 = scmp.eq.s32.totalorder %s4233_s20, 1  ;;  %s2915_s30 = sshll.u32 %s3702_s23, 4  ;;  %s2916_s30 = int_to_ptr.vmem [resolvable:$true] %s2915_s30 }
0x1061   : > { %s3635_s24 = scalar_lea.vmem %s2916_s30, 256  ;;  %p3642_p13 = scmp.lt.s32.totalorder %s2916_s30, %s2916_s30 }
0x1062   : > { %p3636_p10 = scmp.ne.s32.totalorder %s2916_s30, %s3635_s24  ;;  %p3643_p0 = scmp.lt.s32.totalorder %s3635_s24, %s3635_s24 }
0x1064   : > { %p3637_p11 = pnand %p3636_p10, %p4156_p8  ;;  %p3644_p1 = por %p3643_p0, %p3642_p13 }
0x1066   : > { %p3638_p12 = pneg %p3637_p11 }
0x1068   : > { %p3645_p2 = pnand %p3644_p1, %p3638_p12 }
0x106a   : > { %3648 = shalt.err (!%p3645_p2)
}
0x106b   : > { %s4235_s1 = sld [smem:[#allocation17_spill]] }
0x1071   : > { %s3649_s2 = scalar_lea.hbm %s4235_s1, 256 }
0x1072   : > { %p3650_p5 = scmp.ne.s32.totalorder %s4235_s1, %s3649_s2  ;;  %p3655_p3 = scmp.lt.u32.totalorder %s3649_s2, %s4235_s1 }
0x1074   : > { %p3651_p7 = pnand %p3650_p5, %p4156_p8 }
0x1076   : > { %p3652_p9 = pneg %p3651_p7 }
0x1078   : > { %p3657_p4 = pnand %p3655_p3, %p3652_p9 }
0x107a   : > { %3660 = shalt.err (!%p3657_p4)
}
0x107b   : > { %s3703_s21 = smov 128   ;;  %s3704_s14 = smov 8  }
0x107c   : > { %3512 = dma.vmem_to_hbm [thread:$0]  (%p4156_p8), %s2916_s30, 256, %s4235_s1, [#allocation5], %s3703_s21, %s3703_s21, %s3704_s14  }
0x107d   : > { %3678 = dma.done.wait (%p4156_p8), [#allocation5], 256  }
0x107e   : > { %3680 = vsyncadd (%p4156_p8), [#allocation5], 4294967040 }
0x107f PF: > { %s25_s27 = sadd.s32 1, %s3691_s27   ;;  %s4236_s25 = sld [smem:[#allocation9_spill]] }
0x1080   : > { %p22_p6 = scmp.ge.s32.totalorder %s25_s27, 4   ;;  %s4237_s26 = sld [smem:[#allocation10_spill]] }
0x1082   :  { %24 = sbr.rel (!%p22_p6) target bundleno = 11 (0xb), region = 147 }
0x1089   :  { %2931 = vsyncpa [#allocation4], 1 }
0x108a   :  { %2933 = vsyncpa [#allocation4 + $0x1], 1 }
0x108b   :  { %2934 = vsyncpa [#allocation5], 1 }
0x108c   :  { %2936 = vsyncpa [#allocation5 + $0x1], 1 }

</bundles_post_ra>
